<compile_context>
chip_gen: v7x
topology: tpu7x:2x2x1
jax: 0.10.0
libtpu: 0.0.40
codegen_flags: <defaults>
</compile_context>

<pallas_src>
import functools

import jax
import jax.numpy as jnp
from jax import lax
from jax.experimental import pallas as pl
from jax.experimental.pallas import tpu as pltpu


def _dwconv_bn_kernel(x_ref, w_ref, g_ref, b_ref, m_ref, o_ref, xp_ref,
                      *, w_dim, hw, pad, sub, eps):
    # x_ref : (CB, HW)        flattened spatial per channel block
    # w_ref : (CB, 9)         depthwise 3x3 taps, row-major over (kh, kw)
    # g_ref : (CB, 1)         BN scale (gamma)
    # b_ref : (CB, 1)         BN shift (beta)
    # m_ref : (2, HW)         column masks: row0 = (w != 0), row1 = (w != W-1)
    # o_ref : (CB, HW)        output
    # xp_ref: (CB, 2*pad+HW)  lane-padded VMEM scratch
    cb = x_ref.shape[0]
    n_sub = cb // sub

    # Lane-padded copy of the block.  The zero strips at both ends implement
    # the h = -1 / h = H rows of the implicit 3x3 zero padding.
    xp_ref[...] = jnp.zeros_like(xp_ref)
    xp_ref[:, pl.ds(pad, hw)] = x_ref[...]

    not_first = m_ref[pl.ds(0, 1), :]   # (1, HW) 1.0 where w != 0
    not_last = m_ref[pl.ds(1, 1), :]    # (1, HW) 1.0 where w != W-1
    inv_count = 1.0 / float(hw)         # N = 1 -> count = H*W

    def body(i, carry):
        c0 = pl.multiple_of(i * sub, sub)
        taps = w_ref[pl.ds(c0, sub), :]                     # (sub, 9), hoisted

        # ---- depthwise 3x3 conv: 9 shifted multiply-accumulates ----
        acc = jnp.zeros((sub, hw), jnp.float32)
        for kh in range(3):
            for kw in range(3):
                s = (kh - 1) * w_dim + (kw - 1)
                shifted = xp_ref[pl.ds(c0, sub), pl.ds(pad + s, hw)]
                if kw == 0:
                    shifted = shifted * not_first           # w-1 invalid at w=0
                elif kw == 2:
                    shifted = shifted * not_last            # w+1 invalid at w=W-1
                j = kh * 3 + kw
                acc = acc + shifted * taps[:, j:j + 1]      # (sub,1) lane bcast

        # ---- BatchNorm (batch stats, biased variance, two-pass) ----
        mean = jnp.sum(acc, axis=1, keepdims=True) * inv_count     # (sub, 1)
        d = acc - mean
        var = jnp.sum(d * d, axis=1, keepdims=True) * inv_count
        inv_std = lax.rsqrt(var + eps)
        scale = g_ref[pl.ds(c0, sub), :] * inv_std
        o_ref[pl.ds(c0, sub), :] = d * scale + b_ref[pl.ds(c0, sub), :]
        return carry

    lax.fori_loop(0, n_sub, body, 0)


@jax.jit
def dwconv_bn(x_nchw, w_oihw, gamma, beta):
    """x_nchw: (1, C, H, W); w_oihw: (C, 1, 3, 3); gamma/beta: (C,)."""
    N, C, H, W = x_nchw.shape
    assert N == 1, "kernel specialized for the module's batch size of 1"
    HW = H * W
    CB = 128                      # channels per grid block (lane width)
    SUB = 64                      # channels per in-kernel iteration
    PAD = 16                      # >= W + 1, lane pad on each side
    assert C % CB == 0 and CB % SUB == 0
    EPS = 1e-3

    # Free (bitcast) reshapes only -- no transpose / pad HBM traffic.
    x2d = x_nchw.reshape(C, HW).astype(jnp.float32)          # (C, HW)
    w2d = w_oihw.reshape(C, 9).astype(jnp.float32)           # (C, 9) kh*3+kw
    g2d = gamma.reshape(C, 1).astype(jnp.float32)
    b2d = beta.reshape(C, 1).astype(jnp.float32)

    # Tiny constant column masks for the w-direction halo of the 3x3 window.
    col = jnp.arange(HW, dtype=jnp.int32) % W
    wmask = jnp.stack([(col != 0), (col != W - 1)], axis=0).astype(jnp.float32)

    kernel = functools.partial(_dwconv_bn_kernel,
                               w_dim=W, hw=HW, pad=PAD, sub=SUB, eps=EPS)

    out2d = pl.pallas_call(
        kernel,
        out_shape=jax.ShapeDtypeStruct((C, HW), jnp.float32),
        grid=(C // CB,),
        in_specs=[
            pl.BlockSpec((CB, HW), lambda i: (i, 0)),   # x
            pl.BlockSpec((CB, 9), lambda i: (i, 0)),    # taps
            pl.BlockSpec((CB, 1), lambda i: (i, 0)),    # gamma
            pl.BlockSpec((CB, 1), lambda i: (i, 0)),    # beta
            pl.BlockSpec((2, HW), lambda i: (0, 0)),    # column masks
        ],
        out_specs=pl.BlockSpec((CB, HW), lambda i: (i, 0)),
        scratch_shapes=[pltpu.VMEM((CB, 2 * PAD + HW), jnp.float32)],
        compiler_params=pltpu.CompilerParams(
            dimension_semantics=("parallel",)),
    )(x2d, w2d, g2d, b2d, wmask)

    return out2d.reshape(N, C, H, W)


def _reference(x_nchw, w_oihw, gamma, beta, eps=1e-3):
    """Pure-JAX reference (lax conv + batch-stat BN)."""
    C = x_nchw.shape[1]
    y = lax.conv_general_dilated(
        x_nchw, w_oihw, window_strides=(1, 1), padding=((1, 1), (1, 1)),
        dimension_numbers=("NCHW", "OIHW", "NCHW"), feature_group_count=C)
    mean = jnp.mean(y, axis=(0, 2, 3), keepdims=True)
    var = jnp.mean((y - mean) ** 2, axis=(0, 2, 3), keepdims=True)
    return (y - mean) * lax.rsqrt(var + eps) * gamma.reshape(1, C, 1, 1) \
        + beta.reshape(1, C, 1, 1)


if __name__ == "__main__":
    # Shapes implied by the module: x149 = (1, 640, 14, 14)
    N, C, H, W = 1, 640, 14, 14
    key = jax.random.PRNGKey(0)
    kx, kw, kg, kb = jax.random.split(key, 4)

    x = jax.random.normal(kx, (N, C, H, W), jnp.float32)
    w = jax.random.normal(kw, (C, 1, 3, 3), jnp.float32) * 0.1
    gamma = 1.0 + 0.1 * jax.random.normal(kg, (C,), jnp.float32)
    beta = 0.1 * jax.random.normal(kb, (C,), jnp.float32)

    out = jax.block_until_ready(dwconv_bn(x, w, gamma, beta))
    ref = jax.block_until_ready(_reference(x, w, gamma, beta))

    assert out.shape == (N, C, H, W)
    err = float(jnp.max(jnp.abs(out - ref)))
    assert err < 2e-3, f"mismatch vs reference: max abs err = {err}"

    print("KERNEL_OK")
</pallas_src>

<mosaic_0001>
module attributes {stable_mosaic.version = 11 : i64} {
  func.func @_dwconv_bn_kernel(%arg0: i32, %arg1: memref<128x196xf32, #tpu.memory_space<vmem>>, %arg2: memref<128x9xf32, #tpu.memory_space<vmem>>, %arg3: memref<128x1xf32, #tpu.memory_space<vmem>>, %arg4: memref<128x1xf32, #tpu.memory_space<vmem>>, %arg5: memref<2x196xf32, #tpu.memory_space<vmem>>, %arg6: memref<128x196xf32, #tpu.memory_space<vmem>>, %arg7: memref<128x228xf32, #tpu.memory_space<vmem>>) attributes {dimension_semantics = [#tpu.dimension_semantics<parallel>], iteration_bounds = array<i64: 5>, scalar_prefetch = 0 : i64, scratch_operands = 1 : i64, tpu.core_type = #tpu.core_type<tc>, window_params = [{transform_indices = @transform_0, window_bounds = array<i64: 128, 196>}, {transform_indices = @transform_1, window_bounds = array<i64: 128, 9>}, {transform_indices = @transform_2, window_bounds = array<i64: 128, 1>}, {transform_indices = @transform_3, window_bounds = array<i64: 128, 1>}, {pipeline_mode = #tpu.pipeline_mode<synchronous>, transform_indices = @transform_4, window_bounds = array<i64: 2, 196>}, {transform_indices = @transform_5, window_bounds = array<i64: 128, 196>}]} {
    %cst = arith.constant 0.000000e+00 : f32
    %0 = vector.broadcast %cst : f32 to vector<128x228xf32>
    %c0 = arith.constant 0 : index
    %c0_0 = arith.constant 0 : index
    %1 = vector.load %arg7[%c0, %c0_0] : memref<128x228xf32, #tpu.memory_space<vmem>>, vector<128x228xf32>
    tpu.vector_store %arg7[%c0, %c0_0], %0 {strides = array<i32>} : memref<128x228xf32, #tpu.memory_space<vmem>>, vector<128x228xf32>,
    %c0_1 = arith.constant 0 : index
    %c0_2 = arith.constant 0 : index
    %2 = vector.load %arg1[%c0_1, %c0_2] : memref<128x196xf32, #tpu.memory_space<vmem>>, vector<128x196xf32>
    %c0_3 = arith.constant 0 : index
    %c16 = arith.constant 16 : index
    %3 = vector.load %arg7[%c0_3, %c16] : memref<128x228xf32, #tpu.memory_space<vmem>>, vector<128x196xf32>
    tpu.vector_store %arg7[%c0_3, %c16], %2 {strides = array<i32>} : memref<128x228xf32, #tpu.memory_space<vmem>>, vector<128x196xf32>,
    %c0_4 = arith.constant 0 : index
    %c0_5 = arith.constant 0 : index
    %4 = vector.load %arg5[%c0_4, %c0_5] : memref<2x196xf32, #tpu.memory_space<vmem>>, vector<1x196xf32>
    %c1 = arith.constant 1 : index
    %c0_6 = arith.constant 0 : index
    %5 = vector.load %arg5[%c1, %c0_6] : memref<2x196xf32, #tpu.memory_space<vmem>>, vector<1x196xf32>
    %c0_i32 = arith.constant 0 : i32
    %c2_i32 = arith.constant 2 : i32
    %6 = arith.addi %c0_i32, %c2_i32 : i32
    %c1_i32 = arith.constant 1 : i32
    scf.for %arg8 = %c0_i32 to %6 step %c1_i32  : i32 {
      %c64_i32 = arith.constant 64 : i32
      %7 = arith.muli %arg8, %c64_i32 : i32
      %8 = tpu.assume_multiple %7, 64 : i32
      %9 = arith.index_cast %8 : i32 to index
      %c0_8 = arith.constant 0 : index
      %10 = vector.load %arg2[%9, %c0_8] : memref<128x9xf32, #tpu.memory_space<vmem>>, vector<64x9xf32>
      %cst_9 = arith.constant 0.000000e+00 : f32
      %11 = vector.broadcast %cst_9 : f32 to vector<64x196xf32>
      %12 = arith.index_cast %8 : i32 to index
      %c1_10 = arith.constant 1 : index
      %13 = vector.load %arg7[%12, %c1_10] : memref<128x228xf32, #tpu.memory_space<vmem>>, vector<64x196xf32>
      %14 = vector.broadcast %4 : vector<1x196xf32> to vector<64x196xf32>
      %15 = arith.mulf %13, %14 : vector<64x196xf32>
      %16 = vector.extract_strided_slice %10 {offsets = [0, 0], sizes = [64, 1], strides = [1, 1]} : vector<64x9xf32> to vector<64x1xf32>
      %17 = vector.broadcast %16 : vector<64x1xf32> to vector<64x196xf32>
      %18 = arith.mulf %15, %17 : vector<64x196xf32>
      %19 = arith.addf %11, %18 : vector<64x196xf32>
      %20 = arith.index_cast %8 : i32 to index
      %c2 = arith.constant 2 : index
      %21 = vector.load %arg7[%20, %c2] : memref<128x228xf32, #tpu.memory_space<vmem>>, vector<64x196xf32>
      %22 = vector.extract_strided_slice %10 {offsets = [0, 1], sizes = [64, 1], strides = [1, 1]} : vector<64x9xf32> to vector<64x1xf32>
      %23 = vector.broadcast %22 : vector<64x1xf32> to vector<64x196xf32>
      %24 = arith.mulf %21, %23 : vector<64x196xf32>
      %25 = arith.addf %19, %24 : vector<64x196xf32>
      %26 = arith.index_cast %8 : i32 to index
      %c3 = arith.constant 3 : index
      %27 = vector.load %arg7[%26, %c3] : memref<128x228xf32, #tpu.memory_space<vmem>>, vector<64x196xf32>
      %28 = vector.broadcast %5 : vector<1x196xf32> to vector<64x196xf32>
      %29 = arith.mulf %27, %28 : vector<64x196xf32>
      %30 = vector.extract_strided_slice %10 {offsets = [0, 2], sizes = [64, 1], strides = [1, 1]} : vector<64x9xf32> to vector<64x1xf32>
      %31 = vector.broadcast %30 : vector<64x1xf32> to vector<64x196xf32>
      %32 = arith.mulf %29, %31 : vector<64x196xf32>
      %33 = arith.addf %25, %32 : vector<64x196xf32>
      %34 = arith.index_cast %8 : i32 to index
      %c15 = arith.constant 15 : index
      %35 = vector.load %arg7[%34, %c15] : memref<128x228xf32, #tpu.memory_space<vmem>>, vector<64x196xf32>
      %36 = vector.broadcast %4 : vector<1x196xf32> to vector<64x196xf32>
      %37 = arith.mulf %35, %36 : vector<64x196xf32>
      %38 = vector.extract_strided_slice %10 {offsets = [0, 3], sizes = [64, 1], strides = [1, 1]} : vector<64x9xf32> to vector<64x1xf32>
      %39 = vector.broadcast %38 : vector<64x1xf32> to vector<64x196xf32>
      %40 = arith.mulf %37, %39 : vector<64x196xf32>
      %41 = arith.addf %33, %40 : vector<64x196xf32>
      %42 = arith.index_cast %8 : i32 to index
      %c16_11 = arith.constant 16 : index
      %43 = vector.load %arg7[%42, %c16_11] : memref<128x228xf32, #tpu.memory_space<vmem>>, vector<64x196xf32>
      %44 = vector.extract_strided_slice %10 {offsets = [0, 4], sizes = [64, 1], strides = [1, 1]} : vector<64x9xf32> to vector<64x1xf32>
      %45 = vector.broadcast %44 : vector<64x1xf32> to vector<64x196xf32>
      %46 = arith.mulf %43, %45 : vector<64x196xf32>
      %47 = arith.addf %41, %46 : vector<64x196xf32>
      %48 = arith.index_cast %8 : i32 to index
      %c17 = arith.constant 17 : index
      %49 = vector.load %arg7[%48, %c17] : memref<128x228xf32, #tpu.memory_space<vmem>>, vector<64x196xf32>
      %50 = vector.broadcast %5 : vector<1x196xf32> to vector<64x196xf32>
      %51 = arith.mulf %49, %50 : vector<64x196xf32>
      %52 = vector.extract_strided_slice %10 {offsets = [0, 5], sizes = [64, 1], strides = [1, 1]} : vector<64x9xf32> to vector<64x1xf32>
      %53 = vector.broadcast %52 : vector<64x1xf32> to vector<64x196xf32>
      %54 = arith.mulf %51, %53 : vector<64x196xf32>
      %55 = arith.addf %47, %54 : vector<64x196xf32>
      %56 = arith.index_cast %8 : i32 to index
      %c29 = arith.constant 29 : index
      %57 = vector.load %arg7[%56, %c29] : memref<128x228xf32, #tpu.memory_space<vmem>>, vector<64x196xf32>
      %58 = vector.broadcast %4 : vector<1x196xf32> to vector<64x196xf32>
      %59 = arith.mulf %57, %58 : vector<64x196xf32>
      %60 = vector.extract_strided_slice %10 {offsets = [0, 6], sizes = [64, 1], strides = [1, 1]} : vector<64x9xf32> to vector<64x1xf32>
      %61 = vector.broadcast %60 : vector<64x1xf32> to vector<64x196xf32>
      %62 = arith.mulf %59, %61 : vector<64x196xf32>
      %63 = arith.addf %55, %62 : vector<64x196xf32>
      %64 = arith.index_cast %8 : i32 to index
      %c30 = arith.constant 30 : index
      %65 = vector.load %arg7[%64, %c30] : memref<128x228xf32, #tpu.memory_space<vmem>>, vector<64x196xf32>
      %66 = vector.extract_strided_slice %10 {offsets = [0, 7], sizes = [64, 1], strides = [1, 1]} : vector<64x9xf32> to vector<64x1xf32>
      %67 = vector.broadcast %66 : vector<64x1xf32> to vector<64x196xf32>
      %68 = arith.mulf %65, %67 : vector<64x196xf32>
      %69 = arith.addf %63, %68 : vector<64x196xf32>
      %70 = arith.index_cast %8 : i32 to index
      %c31 = arith.constant 31 : index
      %71 = vector.load %arg7[%70, %c31] : memref<128x228xf32, #tpu.memory_space<vmem>>, vector<64x196xf32>
      %72 = vector.broadcast %5 : vector<1x196xf32> to vector<64x196xf32>
      %73 = arith.mulf %71, %72 : vector<64x196xf32>
      %74 = vector.extract_strided_slice %10 {offsets = [0, 8], sizes = [64, 1], strides = [1, 1]} : vector<64x9xf32> to vector<64x1xf32>
      %75 = vector.broadcast %74 : vector<64x1xf32> to vector<64x196xf32>
      %76 = arith.mulf %73, %75 : vector<64x196xf32>
      %77 = arith.addf %69, %76 : vector<64x196xf32>
      %cst_12 = arith.constant dense<0.000000e+00> : vector<64xf32>
      %78 = vector.multi_reduction <add>, %77, %cst_12 [1] : vector<64x196xf32> to vector<64xf32>
      %79 = vector.shape_cast %78 : vector<64xf32> to vector<64x1xf32>
      %cst_13 = arith.constant 0.00510204071 : f32
      %80 = vector.broadcast %cst_13 : f32 to vector<64x1xf32>
      %81 = arith.mulf %79, %80 : vector<64x1xf32>
      %82 = vector.broadcast %81 : vector<64x1xf32> to vector<64x196xf32>
      %83 = arith.subf %77, %82 : vector<64x196xf32>
      %84 = arith.mulf %83, %83 : vector<64x196xf32>
      %cst_14 = arith.constant dense<0.000000e+00> : vector<64xf32>
      %85 = vector.multi_reduction <add>, %84, %cst_14 [1] : vector<64x196xf32> to vector<64xf32>
      %86 = vector.shape_cast %85 : vector<64xf32> to vector<64x1xf32>
      %cst_15 = arith.constant 0.00510204071 : f32
      %87 = vector.broadcast %cst_15 : f32 to vector<64x1xf32>
      %88 = arith.mulf %86, %87 : vector<64x1xf32>
      %cst_16 = arith.constant 1.000000e-03 : f32
      %89 = vector.broadcast %cst_16 : f32 to vector<64x1xf32>
      %90 = arith.addf %88, %89 : vector<64x1xf32>
      %91 = math.rsqrt %90 : vector<64x1xf32>
      %92 = arith.index_cast %8 : i32 to index
      %c0_17 = arith.constant 0 : index
      %93 = vector.load %arg3[%92, %c0_17] : memref<128x1xf32, #tpu.memory_space<vmem>>, vector<64x1xf32>
      %94 = arith.mulf %93, %91 : vector<64x1xf32>
      %95 = vector.broadcast %94 : vector<64x1xf32> to vector<64x196xf32>
      %96 = arith.mulf %83, %95 : vector<64x196xf32>
      %97 = arith.index_cast %8 : i32 to index
      %c0_18 = arith.constant 0 : index
      %98 = vector.load %arg4[%97, %c0_18] : memref<128x1xf32, #tpu.memory_space<vmem>>, vector<64x1xf32>
      %99 = vector.broadcast %98 : vector<64x1xf32> to vector<64x196xf32>
      %100 = arith.addf %96, %99 : vector<64x196xf32>
      %101 = arith.index_cast %8 : i32 to index
      %c0_19 = arith.constant 0 : index
      %102 = vector.load %arg6[%101, %c0_19] : memref<128x196xf32, #tpu.memory_space<vmem>>, vector<64x196xf32>
      tpu.vector_store %arg6[%101, %c0_19], %100 {strides = array<i32>} : memref<128x196xf32, #tpu.memory_space<vmem>>, vector<64x196xf32>,
    }
    %c2_i32_7 = arith.constant 2 : i32
    return
  }
  func.func @transform_0(%arg0: i32) -> (i32, i32) {
    %c0_i32 = arith.constant 0 : i32
    %c0_i32_0 = arith.constant 0 : i32
    return %arg0, %c0_i32 : i32, i32
  }
  func.func @transform_1(%arg0: i32) -> (i32, i32) {
    %c0_i32 = arith.constant 0 : i32
    %c0_i32_0 = arith.constant 0 : i32
    return %arg0, %c0_i32 : i32, i32
  }
  func.func @transform_2(%arg0: i32) -> (i32, i32) {
    %c0_i32 = arith.constant 0 : i32
    %c0_i32_0 = arith.constant 0 : i32
    return %arg0, %c0_i32 : i32, i32
  }
  func.func @transform_3(%arg0: i32) -> (i32, i32) {
    %c0_i32 = arith.constant 0 : i32
    %c0_i32_0 = arith.constant 0 : i32
    return %arg0, %c0_i32 : i32, i32
  }
  func.func @transform_4(%arg0: i32) -> (i32, i32) {
    %c0_i32 = arith.constant 0 : i32
    %c0_i32_0 = arith.constant 0 : i32
    %c0_i32_1 = arith.constant 0 : i32
    return %c0_i32, %c0_i32_0 : i32, i32
  }
  func.func @transform_5(%arg0: i32) -> (i32, i32) {
    %c0_i32 = arith.constant 0 : i32
    %c0_i32_0 = arith.constant 0 : i32
    return %arg0, %c0_i32 : i32, i32
  }
}

</mosaic_0001>

<bundles_post_ra>
// kernel: dwconv_bn.1
= control target key start
LH: loop header
LB: loop body
LE: loop exit
PB: predicated region body
PF: predicated region fallthrough
CT: control target
= control target key end

     0   :  { %s2713_s18 = smov 0   ;;  %s4406_s0 = inlined_call_operand.vmem [shape: f32[640,196], index: 0, kind: input, shape index: {}]   ;;  %s4407_s1 = inlined_call_operand.vmem [shape: f32[640,9], index: 1, kind: input, shape index: {}]   ;;  %s4408_s2 = inlined_call_operand.vmem [shape: f32[640,1], index: 2, kind: input, shape index: {}]   ;;  %s4409_s3 = inlined_call_operand.vmem [shape: f32[640,1], index: 3, kind: input, shape index: {}]   ;;  %s4410_s4 = inlined_call_operand.vmem [shape: f32[2,196], index: 4, kind: input, shape index: {}]   ;;  %s4411_s5 = inlined_call_operand.vmem [shape: f32[640,196], index: 5, kind: output, shape index: {}]  }
   0x1 LB: > { %s2522_s19 = sadd.s32 4294967295, %s2652_s18   ;;  %p2526_p0 = scmp.ge.s32.totalorder %s2652_s18, 1  ;;  %s2652_s18 = sphi %s2713_s18, %s15_s18  }
   0x2   : > { %p222_p1 = scmp.lt.s32.totalorder %s2652_s18, 6 }
   0x4   : > { %p223_p2 = pnand %p2526_p0, %p222_p1 }
   0x5   : > { %s2721_s20 = sshll.u32 (!%p223_p2), %s2522_s19, 4  ;;  %vm300_vm0 = vcmask (!%p223_p2), 818176   ;;  %v2658_v0 = vmov (!%p223_p2), 0.0   ;;  %s2659_s13 = smov (!%p223_p2), 16   ;;  %vm509_vm1 = vcmask (!%p223_p2), 1047680   ;;  %vm460_vm2 = vcmask (!%p223_p2), 130048  }
   0x6   : > { %226 = sbr.rel (%p223_p2) target bundleno = 1789 (0x6fd), region = 40  ;;  %p268_p3 = scmp.lt.s32.totalorder (!%p223_p2), %s2721_s20, 79  ;;  %302 = vst [vmem:[#allocation2 + $0x10] sm:$0xff] (!%p223_p2), %v2658_v0  ;;  %299 = vst [vmem:[#allocation2] sm:$0xff] (!%p223_p2), %v2658_v0  ;;  %vm511_vm3 = vcmask (!%p223_p2), 687104  }
   0x7   : > { %304 = vst [vmem:[#allocation2 + $0x20] sm:$0xff] (!%p223_p2), %v2658_v0  ;;  %306 = vst [vmem:[#allocation2 + $0x30] sm:$0xff] (!%p223_p2), %v2658_v0  ;;  %v2822_v27 = vld [vmem:[%s4410_s4] ss:$2 sm:$0x3] (!%p223_p2)  ;;  %s2889_s19 = smov (!%p223_p2), 0  }
   0x8   : > { %308 = vst [vmem:[#allocation2 + $0x40] sm:$0xff] (!%p223_p2), %v2658_v0  ;;  %310 = vst [vmem:[#allocation2 + $0x50] sm:$0xff] (!%p223_p2), %v2658_v0  ;;  %v2827_v28 = vld [vmem:[%s4410_s4 + $0x1] ss:$2 sm:$0x3] (!%p223_p2) }
   0x9   : > { %312 = vst [vmem:[#allocation2 + $0x60] sm:$0xff] (!%p223_p2), %v2658_v0  ;;  %314 = vst [vmem:[#allocation2 + $0x70] sm:$0xff] (!%p223_p2), %v2658_v0 }
   0xa   : > { %316 = vst [vmem:[#allocation2 + $0x80] sm:$0xff] (!%p223_p2), %v2658_v0  ;;  %318 = vst [vmem:[#allocation2 + $0x90] sm:$0xff] (!%p223_p2), %v2658_v0 }
   0xb   : > { %320 = vst [vmem:[#allocation2 + $0xa0] sm:$0xff] (!%p223_p2), %v2658_v0  ;;  %322 = vst [vmem:[#allocation2 + $0xb0] sm:$0xff] (!%p223_p2), %v2658_v0 }
   0xc   : > { %324 = vst [vmem:[#allocation2 + $0xc0] sm:$0xff] (!%p223_p2), %v2658_v0  ;;  %326 = vst [vmem:[#allocation2 + $0xd0] sm:$0xff] (!%p223_p2), %v2658_v0 }
   0xd   : > { %328 = vst [vmem:[#allocation2 + $0xe0] sm:$0xff] %v2658_v0  ;;  %330 = vst [vmem:[#allocation2 + $0xf0] sm:$0xff] %v2658_v0  ;;  %s4625_s20 = smov (!%p268_p3, %s2721_s20), 79 }
   0xe   : > { %303 = vst.msk [vmem:[#allocation2 + $0x18] sm:$0xff] %vm300_vm0, %v2658_v0  ;;  %301 = vst.msk [vmem:[#allocation2 + $0x8] sm:$0xff] %vm300_vm0, %v2658_v0  ;;  %s2546_s21 = sshll.u32 %s4625_s20, 4  ;;  %s2743_s22 = sshll.u32 %s4625_s20, 3 }
   0xf   : > { %305 = vst.msk [vmem:[#allocation2 + $0x28] sm:$0xff] %vm300_vm0, %v2658_v0  ;;  %307 = vst.msk [vmem:[#allocation2 + $0x38] sm:$0xff] %vm300_vm0, %v2658_v0  ;;  %s2748_s25 = scalar_lea.vmem %s4406_s0, %s2546_s21  ;;  %s278_s28 = scalar_lea.vmem %s4407_s1, %s2743_s22 }
  0x10   : > { %309 = vst.msk [vmem:[#allocation2 + $0x48] sm:$0xff] %vm300_vm0, %v2658_v0  ;;  %311 = vst.msk [vmem:[#allocation2 + $0x58] sm:$0xff] %vm300_vm0, %v2658_v0  ;;  %s284_s6 = scalar_lea.vmem %s4408_s2, %s2743_s22  ;;  %s290_s9 = scalar_lea.vmem %s4409_s3, %s2743_s22  ;;  %v334_v1 = vld [vmem:[%s2748_s25 + $0x10] sm:$0xff]  ;;  %v332_v2 = vld [vmem:[%s2748_s25] sm:$0xff] }
  0x11   : > { %313 = vst.msk [vmem:[#allocation2 + $0x68] sm:$0xff] %vm300_vm0, %v2658_v0  ;;  %315 = vst.msk [vmem:[#allocation2 + $0x78] sm:$0xff] %vm300_vm0, %v2658_v0  ;;  %s2767_s12 = scalar_lea.vmem %s4411_s5, %s2546_s21  ;;  %400 = vrot.lane.b32.xlu1 %v334_v1, %s2659_s13  ;;  %396 = vrot.lane.b32.xlu0 %v332_v2, %s2659_s13  ;;  %v335_v3 = vld [vmem:[%s2748_s25 + $0x18] sm:$0xff]  ;;  %v333_v4 = vld [vmem:[%s2748_s25 + $0x8] sm:$0xff] }
  0x12   : > { %317 = vst.msk [vmem:[#allocation2 + $0x88] sm:$0xff] %vm300_vm0, %v2658_v0  ;;  %319 = vst.msk [vmem:[#allocation2 + $0x98] sm:$0xff] %vm300_vm0, %v2658_v0  ;;  %v337_v5 = vld [vmem:[%s2748_s25 + $0x28] sm:$0xff]  ;;  %v336_v6 = vld [vmem:[%s2748_s25 + $0x20] sm:$0xff] }
  0x13   : > { %321 = vst.msk [vmem:[#allocation2 + $0xa8] sm:$0xff] %vm300_vm0, %v2658_v0  ;;  %323 = vst.msk [vmem:[#allocation2 + $0xb8] sm:$0xff] %vm300_vm0, %v2658_v0  ;;  %v339_v7 = vld [vmem:[%s2748_s25 + $0x38] sm:$0xff]  ;;  %v338_v8 = vld [vmem:[%s2748_s25 + $0x30] sm:$0xff] }
  0x14   : > { %325 = vst.msk [vmem:[#allocation2 + $0xc8] sm:$0xff] %vm300_vm0, %v2658_v0  ;;  %327 = vst.msk [vmem:[#allocation2 + $0xd8] sm:$0xff] %vm300_vm0, %v2658_v0  ;;  %v341_v9 = vld [vmem:[%s2748_s25 + $0x48] sm:$0xff]  ;;  %v340_v10 = vld [vmem:[%s2748_s25 + $0x40] sm:$0xff] }
  0x15   : > { %329 = vst.msk [vmem:[#allocation2 + $0xe8] sm:$0xff] %vm300_vm0, %v2658_v0  ;;  %331 = vst.msk [vmem:[#allocation2 + $0xf8] sm:$0xff] %vm300_vm0, %v2658_v0  ;;  %402 = vrot.lane.b32.xlu1 %v335_v3, %s2659_s13  ;;  %398 = vrot.lane.b32.xlu0 %v333_v4, %s2659_s13  ;;  %v343_v11 = vld [vmem:[%s2748_s25 + $0x58] sm:$0xff]  ;;  %v342_v12 = vld [vmem:[%s2748_s25 + $0x50] sm:$0xff] }
  0x16   : > { %v345_v13 = vld [vmem:[%s2748_s25 + $0x68] sm:$0xff]  ;;  %v344_v14 = vld [vmem:[%s2748_s25 + $0x60] sm:$0xff]  ;;  %v347_v15 = vld [vmem:[%s2748_s25 + $0x78] sm:$0xff]  ;;  %4456 = vst [vmem:[#allocation3_spill] sm:$0xff] %v2822_v27 }
  0x17   : > { %v346_v16 = vld [vmem:[%s2748_s25 + $0x70] sm:$0xff]  ;;  %v349_v17 = vld [vmem:[%s2748_s25 + $0x88] sm:$0xff]  ;;  %v348_v18 = vld [vmem:[%s2748_s25 + $0x80] sm:$0xff]  ;;  %4457 = vst [vmem:[#allocation4_spill] sm:$0xff] %v2827_v28 }
  0x18   : > { %v351_v19 = vld [vmem:[%s2748_s25 + $0x98] sm:$0xff]  ;;  %v350_v20 = vld [vmem:[%s2748_s25 + $0x90] sm:$0xff]  ;;  %v353_v21 = vld [vmem:[%s2748_s25 + $0xa8] sm:$0xff] }
  0x19   : > { %406 = vrot.lane.b32.xlu1 %v337_v5, %s2659_s13  ;;  %404 = vrot.lane.b32.xlu0 %v336_v6, %s2659_s13  ;;  %v352_v22 = vld [vmem:[%s2748_s25 + $0xa0] sm:$0xff]  ;;  %v355_v23 = vld [vmem:[%s2748_s25 + $0xb8] sm:$0xff] }
  0x1a   : > { %v354_v24 = vld [vmem:[%s2748_s25 + $0xb0] sm:$0xff]  ;;  %v357_v25 = vld [vmem:[%s2748_s25 + $0xc8] sm:$0xff]  ;;  %v356_v26 = vld [vmem:[%s2748_s25 + $0xc0] sm:$0xff] }
  0x1b   : > { %v359_v29 = vld [vmem:[%s2748_s25 + $0xd8] sm:$0xff]  ;;  %v358_v30 = vld [vmem:[%s2748_s25 + $0xd0] sm:$0xff]  ;;  %v361_v31 = vld [vmem:[%s2748_s25 + $0xe8] sm:$0xff] }
  0x1c   : > { %v360_v32 = vld [vmem:[%s2748_s25 + $0xe0] sm:$0xff]  ;;  %v363_v33 = vld [vmem:[%s2748_s25 + $0xf8] sm:$0xff]  ;;  %v362_v34 = vld [vmem:[%s2748_s25 + $0xf0] sm:$0xff] }
  0x1d   : > { %410 = vrot.lane.b32.xlu1 %v339_v7, %s2659_s13  ;;  %408 = vrot.lane.b32.xlu0 %v338_v8, %s2659_s13 }
  0x21   : > { %414 = vrot.lane.b32.xlu1 %v341_v9, %s2659_s13  ;;  %412 = vrot.lane.b32.xlu0 %v340_v10, %s2659_s13 }
  0x25   : > { %418 = vrot.lane.b32.xlu1 %v343_v11, %s2659_s13  ;;  %416 = vrot.lane.b32.xlu0 %v342_v12, %s2659_s13 }
  0x29   : > { %422 = vrot.lane.b32.xlu1 %v345_v13, %s2659_s13  ;;  %420 = vrot.lane.b32.xlu0 %v344_v14, %s2659_s13 }
  0x2d   : > { %426 = vrot.lane.b32.xlu1 %v347_v15, %s2659_s13  ;;  %424 = vrot.lane.b32.xlu0 %v346_v16, %s2659_s13 }
  0x31   : > { %430 = vrot.lane.b32.xlu1 %v349_v17, %s2659_s13  ;;  %428 = vrot.lane.b32.xlu0 %v348_v18, %s2659_s13 }
  0x35   : > { %434 = vrot.lane.b32.xlu1 %v351_v19, %s2659_s13  ;;  %432 = vrot.lane.b32.xlu0 %v350_v20, %s2659_s13 }
  0x39   : > { %438 = vrot.lane.b32.xlu1 %v353_v21, %s2659_s13  ;;  %436 = vrot.lane.b32.xlu0 %v352_v22, %s2659_s13 }
  0x3d   : > { %442 = vrot.lane.b32.xlu1 %v355_v23, %s2659_s13  ;;  %440 = vrot.lane.b32.xlu0 %v354_v24, %s2659_s13 }
  0x41   : > { %446 = vrot.lane.b32.xlu1 %v357_v25, %s2659_s13  ;;  %444 = vrot.lane.b32.xlu0 %v356_v26, %s2659_s13 }
  0x45   : > { %450 = vrot.lane.b32.xlu1 %v359_v29, %s2659_s13  ;;  %448 = vrot.lane.b32.xlu0 %v358_v30, %s2659_s13 }
  0x49   : > { %454 = vrot.lane.b32.xlu1 %v361_v31, %s2659_s13  ;;  %452 = vrot.lane.b32.xlu0 %v360_v32, %s2659_s13 }
  0x4d   : > { %458 = vrot.lane.b32.xlu1 %v363_v33, %s2659_s13  ;;  %456 = vrot.lane.b32.xlu0 %v362_v34, %s2659_s13 }
  0x83   : > { %v401_v35 = vpop.permute.xlu1 %400  ;;  %v397_v36 = vpop.permute.xlu0 %396 }
  0x84   : > { %513 = vst.msk [vmem:[#allocation2 + $0x10] sm:$0xff] %vm509_vm1, %v401_v35  ;;  %510 = vst.msk [vmem:[#allocation2] sm:$0xff] %vm509_vm1, %v397_v36 }
  0x87   : > { %v403_v37 = vpop.permute.xlu1 %402  ;;  %v399_v38 = vpop.permute.xlu0 %398 }
  0x88   : > { %v462_v39 = vsel %vm460_vm2, %v401_v35, %v403_v37  ;;  %v461_v40 = vsel %vm460_vm2, %v397_v36, %v399_v38 }
  0x89   : > { %514 = vst.msk [vmem:[#allocation2 + $0x18] sm:$0xff] %vm511_vm3, %v462_v39  ;;  %512 = vst.msk [vmem:[#allocation2 + $0x8] sm:$0xff] %vm511_vm3, %v461_v40 }
  0x8b   : > { %v407_v41 = vpop.permute.xlu1 %406  ;;  %v405_v42 = vpop.permute.xlu0 %404 }
  0x8c   : > { %v463_v43 = vsel %vm460_vm2, %v405_v42, %v407_v41  ;;  %515 = vst.msk [vmem:[#allocation2 + $0x20] sm:$0xff] %vm509_vm1, %v405_v42 }
  0x8d   : > { %516 = vst.msk [vmem:[#allocation2 + $0x28] sm:$0xff] %vm511_vm3, %v463_v43 }
  0x8f   : > { %v411_v44 = vpop.permute.xlu1 %410  ;;  %v409_v45 = vpop.permute.xlu0 %408 }
  0x90   : > { %v464_v46 = vsel %vm460_vm2, %v409_v45, %v411_v44  ;;  %517 = vst.msk [vmem:[#allocation2 + $0x30] sm:$0xff] %vm509_vm1, %v409_v45 }
  0x91   : > { %518 = vst.msk [vmem:[#allocation2 + $0x38] sm:$0xff] %vm511_vm3, %v464_v46 }
  0x93   : > { %v415_v47 = vpop.permute.xlu1 %414  ;;  %v413_v48 = vpop.permute.xlu0 %412 }
  0x94   : > { %v465_v49 = vsel %vm460_vm2, %v413_v48, %v415_v47  ;;  %519 = vst.msk [vmem:[#allocation2 + $0x40] sm:$0xff] %vm509_vm1, %v413_v48 }
  0x95   : > { %520 = vst.msk [vmem:[#allocation2 + $0x48] sm:$0xff] %vm511_vm3, %v465_v49 }
  0x97   : > { %v419_v50 = vpop.permute.xlu1 %418  ;;  %v417_v51 = vpop.permute.xlu0 %416 }
  0x98   : > { %v466_v52 = vsel %vm460_vm2, %v417_v51, %v419_v50  ;;  %521 = vst.msk [vmem:[#allocation2 + $0x50] sm:$0xff] %vm509_vm1, %v417_v51 }
  0x99   : > { %522 = vst.msk [vmem:[#allocation2 + $0x58] sm:$0xff] %vm511_vm3, %v466_v52 }
  0x9b   : > { %v423_v53 = vpop.permute.xlu1 %422  ;;  %v421_v54 = vpop.permute.xlu0 %420 }
  0x9c   : > { %v467_v55 = vsel %vm460_vm2, %v421_v54, %v423_v53  ;;  %523 = vst.msk [vmem:[#allocation2 + $0x60] sm:$0xff] %vm509_vm1, %v421_v54 }
  0x9d   : > { %524 = vst.msk [vmem:[#allocation2 + $0x68] sm:$0xff] %vm511_vm3, %v467_v55 }
  0x9f   : > { %v427_v56 = vpop.permute.xlu1 %426  ;;  %v425_v57 = vpop.permute.xlu0 %424 }
  0xa0   : > { %v468_v58 = vsel %vm460_vm2, %v425_v57, %v427_v56  ;;  %525 = vst.msk [vmem:[#allocation2 + $0x70] sm:$0xff] %vm509_vm1, %v425_v57 }
  0xa1   : > { %526 = vst.msk [vmem:[#allocation2 + $0x78] sm:$0xff] %vm511_vm3, %v468_v58 }
  0xa3   : > { %v431_v59 = vpop.permute.xlu1 %430  ;;  %v429_v60 = vpop.permute.xlu0 %428 }
  0xa4   : > { %v469_v61 = vsel %vm460_vm2, %v429_v60, %v431_v59  ;;  %527 = vst.msk [vmem:[#allocation2 + $0x80] sm:$0xff] %vm509_vm1, %v429_v60 }
  0xa5   : > { %528 = vst.msk [vmem:[#allocation2 + $0x88] sm:$0xff] %vm511_vm3, %v469_v61 }
  0xa7   : > { %v435_v62 = vpop.permute.xlu1 %434  ;;  %v433_v63 = vpop.permute.xlu0 %432 }
  0xa8   : > { %v470_v0 = vsel %vm460_vm2, %v433_v63, %v435_v62  ;;  %529 = vst.msk [vmem:[#allocation2 + $0x90] sm:$0xff] %vm509_vm1, %v433_v63 }
  0xa9   : > { %530 = vst.msk [vmem:[#allocation2 + $0x98] sm:$0xff] %vm511_vm3, %v470_v0 }
  0xab   : > { %v439_v1 = vpop.permute.xlu1 %438  ;;  %v437_v2 = vpop.permute.xlu0 %436 }
  0xac   : > { %v471_v3 = vsel %vm460_vm2, %v437_v2, %v439_v1  ;;  %531 = vst.msk [vmem:[#allocation2 + $0xa0] sm:$0xff] %vm509_vm1, %v437_v2 }
  0xad   : > { %532 = vst.msk [vmem:[#allocation2 + $0xa8] sm:$0xff] %vm511_vm3, %v471_v3 }
  0xaf   : > { %v443_v4 = vpop.permute.xlu1 %442  ;;  %v441_v5 = vpop.permute.xlu0 %440 }
  0xb0   : > { %v472_v6 = vsel %vm460_vm2, %v441_v5, %v443_v4  ;;  %533 = vst.msk [vmem:[#allocation2 + $0xb0] sm:$0xff] %vm509_vm1, %v441_v5 }
  0xb1   : > { %534 = vst.msk [vmem:[#allocation2 + $0xb8] sm:$0xff] %vm511_vm3, %v472_v6 }
  0xb3   : > { %v447_v7 = vpop.permute.xlu1 %446  ;;  %v445_v8 = vpop.permute.xlu0 %444 }
  0xb4   : > { %v473_v9 = vsel %vm460_vm2, %v445_v8, %v447_v7  ;;  %535 = vst.msk [vmem:[#allocation2 + $0xc0] sm:$0xff] %vm509_vm1, %v445_v8 }
  0xb5   : > { %536 = vst.msk [vmem:[#allocation2 + $0xc8] sm:$0xff] %vm511_vm3, %v473_v9 }
  0xb7   : > { %v451_v10 = vpop.permute.xlu1 %450  ;;  %v449_v11 = vpop.permute.xlu0 %448 }
  0xb8   : > { %v474_v12 = vsel %vm460_vm2, %v449_v11, %v451_v10  ;;  %537 = vst.msk [vmem:[#allocation2 + $0xd0] sm:$0xff] %vm509_vm1, %v449_v11 }
  0xb9   : > { %538 = vst.msk [vmem:[#allocation2 + $0xd8] sm:$0xff] %vm511_vm3, %v474_v12 }
  0xbb   : > { %v455_v13 = vpop.permute.xlu1 %454  ;;  %v453_v14 = vpop.permute.xlu0 %452 }
  0xbc   : > { %v475_v15 = vsel %vm460_vm2, %v453_v14, %v455_v13  ;;  %539 = vst.msk [vmem:[#allocation2 + $0xe0] sm:$0xff] %vm509_vm1, %v453_v14 }
  0xbd   : > { %540 = vst.msk [vmem:[#allocation2 + $0xe8] sm:$0xff] %vm511_vm3, %v475_v15 }
  0xbf   : > { %v459_v16 = vpop.permute.xlu1 %458  ;;  %v457_v17 = vpop.permute.xlu0 %456 }
  0xc0   : > { %v476_v18 = vsel %vm460_vm2, %v457_v17, %v459_v16  ;;  %541 = vst.msk [vmem:[#allocation2 + $0xf0] sm:$0xff] %vm509_vm1, %v457_v17 }
  0xc1   : > { %542 = vst.msk [vmem:[#allocation2 + $0xf8] sm:$0xff] %vm511_vm3, %v476_v18 }
  0xc2 LB: >> { %v4458_v28 = vld [vmem:[#allocation4_spill] sm:$0xff]  ;;  %v4459_v27 = vld [vmem:[#allocation3_spill] sm:$0xff]  ;;  %v584_v19 = vlaneseq  ;;  %v4412_v20 = vmov 0   ;;  %v2661_v21 = vmov 1   ;;  %s2896_s20 = sshll.u32 %s2656_s19, 6  ;;  %s2662_s25 = smov 1   ;;  %s2656_s19 = sphi %s2889_s19, %s551_s19  }
  0xc3   : >> { %2591 = vset.pattern.permute.xlu1 %v4412_v20  ;;  %2593 = vset.pattern.permute.xlu0 %v2661_v21  ;;  %s2904_s24 = scalar_lea.vmem %s278_s28, %s2896_s20  ;;  %s2663_s26 = smov 3   ;;  %v2664_v36 = vmov 2   ;;  %v2666_v40 = vmov 3   ;;  %vm838_vm4 = vcmask 23552   ;;  %vm999_vm5 = vcmask 121856  }
  0xc4   : >> { %v585_v22 = vshrl.u32 %v584_v19, 7  ;;  %v2907_v23 = vld [vmem:[%s2904_s24] sm:$0xff]  ;;  %v2914_v29 = vld [vmem:[%s2904_s24 + $0x8] sm:$0xff]  ;;  %v2922_v31 = vld [vmem:[%s2904_s24 + $0x18] sm:$0xff]  ;;  %s2665_s27 = smov 15   ;;  %s562_s29 = sshra.s32 %s2896_s20, 3 }
  0xc5   : >> { %618 = vperm.xlu1 %2591, %v2907_v23   ;;  %v2927_v32 = vld [vmem:[%s2904_s24 + $0x20] sm:$0xff]  ;;  %v2932_v33 = vld [vmem:[%s2904_s24 + $0x30] sm:$0xff]  ;;  %v2949_v37 = vld [vmem:[%s2904_s24 + $0x28] sm:$0xff]  ;;  %s2983_s30 = sshll.u32 %s562_s29, 4  ;;  %s2667_s8 = smov 127   ;;  %vm1297_vm6 = vcmask 138240  }
  0xc6   : >> { %v586_v24 = vsub.s32 0, %v585_v22  ;;  %v590_v25 = vsub.s32 1, %v585_v22  ;;  %v2942_v35 = vld [vmem:[%s2904_s24 + $0x10] sm:$0xff]  ;;  %v2954_v38 = vld [vmem:[%s2904_s24 + $0x38] sm:$0xff]  ;;  %s2990_s7 = scalar_lea.vmem [#allocation2], %s2983_s30  ;;  %s2668_s10 = smov 126  }
  0xc7   : >> { %s2669_s11 = smov 114   ;;  %s2673_s13 = smov 17   ;;  %vm1458_vm7 = vcmask 236544   ;;  %vm1755_vm8 = vcmask 252928   ;;  %vm596_vm9 = vcmask 7168   ;;  %vm784_vm10 = vcmask 1039360  }
  0xc8   : >> { %v2911_v26 = vrot.slane %v4459_v27, %v586_v24  ;;  %v2918_v30 = vrot.slane %v4459_v27, %v590_v25  ;;  %v2938_v34 = vrot.slane %v4458_v28, %v586_v24  ;;  %v2959_v39 = vrot.slane %v4458_v28, %v590_v25  ;;  %v2993_v48 = vld [vmem:[%s2990_s7] sm:$0xff]  ;;  %v2996_v49 = vld [vmem:[%s2990_s7 + $0x8] sm:$0xff]  ;;  %v3001_v53 = vld [vmem:[%s2990_s7 + $0x10] sm:$0xff]  ;;  %s2675_s14 = smov 29   ;;  %s2677_s15 = smov 31  }
  0xc9   : >> { %623 = vperm.xlu1 %2591, %v2914_v29   ;;  %v3004_v54 = vld [vmem:[%s2990_s7 + $0x18] sm:$0xff]  ;;  %v3013_v59 = vld [vmem:[%s2990_s7 + $0x20] sm:$0xff]  ;;  %v3016_v60 = vld [vmem:[%s2990_s7 + $0x28] sm:$0xff]  ;;  %s2678_s16 = smov 113   ;;  %s2679_s17 = smov 112   ;;  %vm954_vm11 = vcmask 1031168  }
  0xca   : >> { %592 = vrot.lane.b32.xlu0 %v2911_v26, %s2662_s25  ;;  %v3023_v0 = vld [vmem:[%s2990_s7 + $0x30] sm:$0xff]  ;;  %v3026_v1 = vld [vmem:[%s2990_s7 + $0x38] sm:$0xff]  ;;  %v3033_v6 = vld [vmem:[%s2990_s7 + $0x40] sm:$0xff]  ;;  %s2680_s21 = smov 100   ;;  %s2681_s23 = smov 99   ;;  %vm1115_vm12 = vcmask 932864  }
  0xcb   : >> { %v3036_v7 = vld [vmem:[%s2990_s7 + $0x48] sm:$0xff]  ;;  %v3043_v12 = vld [vmem:[%s2990_s7 + $0x50] sm:$0xff]  ;;  %v3046_v13 = vld [vmem:[%s2990_s7 + $0x58] sm:$0xff]  ;;  %s2682_s24 = smov 98   ;;  %vm1252_vm13 = vcmask 924672   ;;  %vm1413_vm14 = vcmask 916480  }
  0xcc   : >> { %v3053_v17 = vld [vmem:[%s2990_s7 + $0x60] sm:$0xff]  ;;  %v3056_v18 = vld [vmem:[%s2990_s7 + $0x68] sm:$0xff]  ;;  %v3065_v25 = vld [vmem:[%s2990_s7 + $0x70] sm:$0xff]  ;;  %vm1710_vm15 = vcmask 809984   ;;  %vm1871_vm1 = vcmask 801792   ;;  %vm1984_vm2 = vcmask 556032  }
  0xcd   : >> { %633 = vperm.xlu1 %2591, %v2922_v31   ;;  %s551_s19 = sadd.s32 1, %s2656_s19  }
  0xce   : >> { %594 = vrot.lane.b32.xlu0 %v2918_v30, %s2662_s25  ;;  %p548_p4 = scmp.ge.s32.totalorder %s551_s19, 2  }
  0xd1   : >> { %638 = vperm.xlu1 %2591, %v2927_v32  }
  0xd2   : >> { %693 = vperm.xlu0 %2593, %v2914_v29  }
  0xd5   : >> { %648 = vperm.xlu1 %2591, %v2932_v33  }
  0xd6   : >> { %705 = vperm.xlu0 %2593, %v2927_v32  }
  0xd9   : >> { %2592 = vset.pattern.permute.xlu1 %v2661_v21 }
  0xda   : >> { %713 = vperm.xlu0 %2593, %v2932_v33   ;;  %689 = vperm.xlu1 %2592, %v2907_v23  }
  0xde   : >> { %834 = vrot.lane.b32.xlu0 %v2938_v34, %s2663_s26  ;;  %697 = vperm.xlu1 %2592, %v2942_v35  }
  0xdf   : >> { %2594 = vset.pattern.permute.xlu0 %v2664_v36 }
  0xe2   : >> { %859 = vperm.xlu0 %2594, %v2907_v23   ;;  %701 = vperm.xlu1 %2592, %v2922_v31  }
  0xe6   : >> { %871 = vperm.xlu0 %2594, %v2922_v31   ;;  %709 = vperm.xlu1 %2592, %v2949_v37  }
  0xea   : >> { %879 = vperm.xlu0 %2594, %v2949_v37   ;;  %717 = vperm.xlu1 %2592, %v2954_v38  }
  0xee   : >> { %887 = vperm.xlu0 %2594, %v2954_v38   ;;  %836 = vrot.lane.b32.xlu1 %v2959_v39, %s2663_s26 }
  0xef   : >> { %2595 = vset.pattern.permute.xlu1 %v2664_v36  ;;  %v3068_v36 = vld [vmem:[%s2990_s7 + $0x78] sm:$0xff] }
  0xf2   : >> { %997 = vrot.lane.b32.xlu0 %v2918_v30, %s2665_s27  ;;  %863 = vperm.xlu1 %2595, %v2914_v29  }
  0xf3   : >> { %2597 = vset.pattern.permute.xlu0 %v2666_v40 }
  0xf6   : >> { %1024 = vperm.xlu0 %2597, %v2914_v29   ;;  %867 = vperm.xlu1 %2595, %v2942_v35  }
  0xfa   : >> { %875 = vperm.xlu1 %2595, %v2927_v32  }
  0xfe   : >> { %883 = vperm.xlu1 %2595, %v2932_v33  }
 0x102   : >> { %995 = vrot.lane.b32.xlu1 %v2911_v26, %s2665_s27  ;;  %s4306_s27 = scalar_lea.vmem %s290_s9, %s2896_s20 }
 0x103   : >> { %2596 = vset.pattern.permute.xlu1 %v2666_v40 }
 0x106   : >> { %1020 = vperm.xlu1 %2596, %v2907_v23  }
 0x10a   : >> { %1028 = vperm.xlu1 %2596, %v2942_v35  }
 0x13c   : >> { %v2981_v45 = vpop.permute.xlu0 %592 }
 0x140   : >> { %v2987_v47 = vpop.permute.xlu0 %594 }
 0x144   : >> { %v2972_v41 = vpop.permute.xlu1 %618 }
 0x148   : >> { %v2974_v42 = vpop.permute.xlu1 %623 }
 0x14c   : >> { %v2976_v43 = vpop.permute.xlu1 %633 }
 0x150   : >> { %v2979_v44 = vpop.permute.xlu1 %638 }
 0x151   : >> { %v694_v55 = vpop.permute.xlu0 %693 }
 0x152   : >> { %v722_v56 = vmul.f32 %v694_v55, %v3001_v53  ;;  %v723_v57 = vmul.f32 %v694_v55, %v3004_v54 }
 0x154   : >> { %v2985_v46 = vpop.permute.xlu1 %648 }
 0x155   : >> { %v706_v3 = vpop.permute.xlu0 %705 }
 0x156   : >> { %v728_v8 = vmul.f32 %v706_v3, %v3033_v6  ;;  %v729_v9 = vmul.f32 %v706_v3, %v3036_v7 }
 0x159   : >> { %v690_v50 = vpop.permute.xlu1 %689  ;;  %v714_v11 = vpop.permute.xlu0 %713 }
 0x15a   : >> { %v720_v51 = vmul.f32 %v690_v50, %v2993_v48  ;;  %v721_v52 = vmul.f32 %v690_v50, %v2996_v49  ;;  %v732_v19 = vmul.f32 %v714_v11, %v3053_v17  ;;  %v733_v21 = vmul.f32 %v714_v11, %v3056_v18 }
 0x15c   : >> { %754 = vrot.lane.b32.xlu1 %v721_v52, %s2667_s8  ;;  %752 = vrot.lane.b32.xlu0 %v720_v51, %s2667_s8 }
 0x15d   : >> { %v698_v58 = vpop.permute.xlu1 %697  ;;  %v835_v22 = vpop.permute.xlu0 %834 }
 0x15e   : >> { %v724_v62 = vmul.f32 %v698_v58, %v3013_v59  ;;  %v725_v63 = vmul.f32 %v698_v58, %v3016_v60  ;;  %v842_v40 = vmul.f32 %v835_v22, %v2993_v48 }
 0x160   : >> { %758 = vrot.lane.b32.xlu1 %v723_v57, %s2667_s8  ;;  %756 = vrot.lane.b32.xlu0 %v722_v56, %s2667_s8 }
 0x161   : >> { %v702_v61 = vpop.permute.xlu1 %701  ;;  %v860_v55 = vpop.permute.xlu0 %859 }
 0x162   : >> { %v726_v4 = vmul.f32 %v702_v61, %v3023_v0  ;;  %v727_v5 = vmul.f32 %v702_v61, %v3026_v1  ;;  %v890_v57 = vmul.f32 %v860_v55, %v842_v40 }
 0x164   : >> { %762 = vrot.lane.b32.xlu1 %v725_v63, %s2667_s8  ;;  %760 = vrot.lane.b32.xlu0 %v724_v62, %s2667_s8  ;;  %v844_v62 = vmul.f32 %v835_v22, %v3001_v53 }
 0x165   : >> { %v710_v2 = vpop.permute.xlu1 %709 }
 0x166   : >> { %v730_v14 = vmul.f32 %v710_v2, %v3043_v12  ;;  %v731_v15 = vmul.f32 %v710_v2, %v3046_v13 }
 0x168   : >> { %766 = vrot.lane.b32.xlu1 %v727_v5, %s2667_s8  ;;  %764 = vrot.lane.b32.xlu0 %v726_v4, %s2667_s8  ;;  %v846_v4 = vmul.f32 %v835_v22, %v3013_v59 }
 0x169   : >> { %v718_v10 = vpop.permute.xlu1 %717 }
 0x16a   : >> { %v734_v50 = vmul.f32 %v718_v10, %v3065_v25  ;;  %v735_v51 = vmul.f32 %v718_v10, %v3068_v36 }
 0x16c   : >> { %770 = vrot.lane.b32.xlu1 %v729_v9, %s2667_s8  ;;  %768 = vrot.lane.b32.xlu0 %v728_v8, %s2667_s8  ;;  %v848_v8 = vmul.f32 %v835_v22, %v3023_v0 }
 0x16d   : >> { %v837_v16 = vpop.permute.xlu1 %836 }
 0x16e   : >> { %v3060_v24 = vsel %vm838_vm4, %v835_v22, %v837_v16 }
 0x16f   : >> { %v843_v52 = vmul.f32 %v3060_v24, %v2996_v49  ;;  %v845_v58 = vmul.f32 %v3060_v24, %v3004_v54  ;;  %v847_v5 = vmul.f32 %v3060_v24, %v3016_v60  ;;  %v849_v11 = vmul.f32 %v3060_v24, %v3026_v1 }
 0x170   : >> { %774 = vrot.lane.b32.xlu1 %v731_v15, %s2667_s8  ;;  %772 = vrot.lane.b32.xlu0 %v730_v14, %s2667_s8  ;;  %v872_v14 = vpop.permute.xlu0 %871  ;;  %v851_v40 = vmul.f32 %v3060_v24, %v3036_v7 }
 0x171   : >> { %v864_v56 = vpop.permute.xlu1 %863  ;;  %v891_v61 = vmul.f32 %v860_v55, %v843_v52  ;;  %v896_v15 = vmul.f32 %v872_v14, %v848_v8  ;;  %v897_v16 = vmul.f32 %v872_v14, %v849_v11  ;;  %v853_v55 = vmul.f32 %v3060_v24, %v3046_v13 }
 0x172   : >> { %v892_v63 = vmul.f32 %v864_v56, %v844_v62  ;;  %v893_v2 = vmul.f32 %v864_v56, %v845_v58  ;;  %v854_v62 = vmul.f32 %v835_v22, %v3053_v17 }
 0x174   : >> { %778 = vrot.lane.b32.xlu1 %v733_v21, %s2667_s8  ;;  %776 = vrot.lane.b32.xlu0 %v732_v19, %s2667_s8  ;;  %v850_v21 = vmul.f32 %v835_v22, %v3033_v6  ;;  %v880_v56 = vpop.permute.xlu0 %879 }
 0x175   : >> { %v868_v3 = vpop.permute.xlu1 %867  ;;  %v901_v58 = vmul.f32 %v880_v56, %v853_v55 }
 0x176   : >> { %v894_v9 = vmul.f32 %v868_v3, %v846_v4  ;;  %v895_v10 = vmul.f32 %v868_v3, %v847_v5 }
 0x178   : >> { %782 = vrot.lane.b32.xlu1 %v735_v51, %s2667_s8  ;;  %780 = vrot.lane.b32.xlu0 %v734_v50, %s2667_s8  ;;  %v852_v50 = vmul.f32 %v835_v22, %v3043_v12  ;;  %v888_v5 = vpop.permute.xlu0 %887 }
 0x179   : >> { %v876_v19 = vpop.permute.xlu1 %875 }
 0x17a   : >> { %v898_v51 = vmul.f32 %v876_v19, %v850_v21  ;;  %v899_v52 = vmul.f32 %v876_v19, %v851_v40 }
 0x17c   : >> { %922 = vrot.lane.b32.xlu1 %v890_v57, %s2668_s10  ;;  %924 = vrot.lane.b32.xlu0 %v891_v61, %s2668_s10  ;;  %v900_v57 = vmul.f32 %v880_v56, %v852_v50  ;;  %v998_v11 = vpop.permute.xlu0 %997 }
 0x17d   : >> { %v884_v61 = vpop.permute.xlu1 %883 }
 0x17e   : >> { %v902_v3 = vmul.f32 %v884_v61, %v854_v62 }
 0x180   : >> { %928 = vrot.lane.b32.xlu0 %v893_v2, %s2668_s10  ;;  %926 = vrot.lane.b32.xlu1 %v892_v63, %s2668_s10  ;;  %v855_v63 = vmul.f32 %v3060_v24, %v3056_v18  ;;  %v856_v2 = vmul.f32 %v835_v22, %v3065_v25  ;;  %v1025_v40 = vpop.permute.xlu0 %1024 }
 0x182   : >> { %v903_v4 = vmul.f32 %v884_v61, %v855_v63  ;;  %v904_v8 = vmul.f32 %v888_v5, %v856_v2  ;;  %v2670_v63 = vmov 4  }
 0x184   : >> { %932 = vrot.lane.b32.xlu0 %v895_v10, %s2668_s10  ;;  %930 = vrot.lane.b32.xlu1 %v894_v9, %s2668_s10  ;;  %v3110_v9 = vpop.permute.xlu1 %995  ;;  %v857_v10 = vmul.f32 %v3060_v24, %v3068_v36 }
 0x185   : >> { %v1003_v22 = vmul.f32 %v3110_v9, %v2993_v48  ;;  %v3121_v14 = vsel %vm999_vm5, %v3110_v9, %v998_v11  ;;  %v1005_v21 = vmul.f32 %v3110_v9, %v3001_v53  ;;  %v1007_v50 = vmul.f32 %v3110_v9, %v3013_v59 }
 0x186   : >> { %v1004_v24 = vmul.f32 %v3121_v14, %v2996_v49 }
 0x187   : >> { %v1053_v55 = vmul.f32 %v1025_v40, %v1005_v21 }
 0x188   : >> { %936 = vrot.lane.b32.xlu0 %v897_v16, %s2668_s10  ;;  %934 = vrot.lane.b32.xlu1 %v896_v15, %s2668_s10  ;;  %v1021_v15 = vpop.permute.xlu1 %1020  ;;  %v905_v16 = vmul.f32 %v888_v5, %v857_v10 }
 0x189   : >> { %v1051_v19 = vmul.f32 %v1021_v15, %v1003_v22 }
 0x18c   : >> { %940 = vrot.lane.b32.xlu0 %v899_v52, %s2668_s10  ;;  %938 = vrot.lane.b32.xlu1 %v898_v51, %s2668_s10  ;;  %v1052_v51 = vmul.f32 %v1021_v15, %v1004_v24  ;;  %v1006_v52 = vmul.f32 %v3121_v14, %v3004_v54  ;;  %v1029_v56 = vpop.permute.xlu1 %1028 }
 0x18d   : >> { %v1055_v61 = vmul.f32 %v1029_v56, %v1007_v50 }
 0x190   : >> { %944 = vrot.lane.b32.xlu0 %v901_v58, %s2668_s10  ;;  %942 = vrot.lane.b32.xlu1 %v900_v57, %s2668_s10  ;;  %v1054_v57 = vmul.f32 %v1025_v40, %v1006_v52  ;;  %v1008_v58 = vmul.f32 %v3121_v14, %v3016_v60 }
 0x192   : >> { %v1056_v62 = vmul.f32 %v1029_v56, %v1008_v58 }
 0x194   : >> { %948 = vrot.lane.b32.xlu0 %v903_v4, %s2668_s10  ;;  %946 = vrot.lane.b32.xlu1 %v902_v3, %s2668_s10 }
 0x198   : >> { %1036 = vperm.xlu0 %2597, %v2927_v32   ;;  %950 = vrot.lane.b32.xlu1 %v904_v8, %s2668_s10 }
 0x19c   : >> { %1044 = vperm.xlu0 %2597, %v2932_v33   ;;  %1032 = vperm.xlu1 %2596, %v2922_v31  }
 0x1a0   : >> { %952 = vrot.lane.b32.xlu0 %v905_v16, %s2668_s10  ;;  %1040 = vperm.xlu1 %2596, %v2949_v37   ;;  %s4320_s10 = scalar_lea.vmem %s284_s6, %s2896_s20  ;;  %s4366_s20 = scalar_lea.vmem %s2767_s12, %s2983_s30 }
 0x1a1   : >> { %2598 = vset.pattern.permute.xlu0 %v2670_v63 }
 0x1a4   : >> { %1048 = vperm.xlu1 %2596, %v2954_v38   ;;  %1083 = vrot.lane.b32.xlu0 %v1051_v19, %s2669_s11 }
 0x1a8   : >> { %1085 = vrot.lane.b32.xlu1 %v1052_v51, %s2669_s11  ;;  %1087 = vrot.lane.b32.xlu0 %v1053_v55, %s2669_s11 }
 0x1a9   : >> { %2599 = vset.pattern.permute.xlu1 %v2670_v63 }
 0x1ac   : >> { %1089 = vrot.lane.b32.xlu1 %v1054_v57, %s2669_s11  ;;  %1091 = vrot.lane.b32.xlu0 %v1055_v61, %s2669_s11 }
 0x1b0   : >> { %1093 = vrot.lane.b32.xlu1 %v1056_v62, %s2669_s11 }
 0x1ce   : >> { %v3142_v2 = vpop.permute.xlu0 %752  ;;  %v3144_v3 = vpop.permute.xlu1 %754 }
 0x1d2   : >> { %v3146_v4 = vpop.permute.xlu0 %756  ;;  %v3148_v5 = vpop.permute.xlu1 %758 }
 0x1d6   : >> { %v3150_v8 = vpop.permute.xlu0 %760  ;;  %v3152_v10 = vpop.permute.xlu1 %762 }
 0x1d7   : >> { %4460 = vst [vmem:[#allocation5_spill] sm:$0xff] %v3150_v8  ;;  %4461 = vst [vmem:[#allocation6_spill] sm:$0xff] %v3152_v10 }
 0x1da   : >> { %v3154_v11 = vpop.permute.xlu0 %764  ;;  %v3156_v22 = vpop.permute.xlu1 %766 }
 0x1de   : >> { %v3158_v15 = vpop.permute.xlu0 %768  ;;  %v3160_v16 = vpop.permute.xlu1 %770 }
 0x1e2   : >> { %v3162_v24 = vpop.permute.xlu1 %774  ;;  %v3164_v19 = vpop.permute.xlu0 %772 }
 0x1e3   : >> { %4462 = vst [vmem:[#allocation7_spill] sm:$0xff] %v3162_v24  ;;  %4463 = vst [vmem:[#allocation8_spill] sm:$0xff] %v3164_v19  ;;  %v1013_v19 = vmul.f32 %v3110_v9, %v3043_v12 }
 0x1e6   : >> { %v3166_v21 = vpop.permute.xlu1 %778  ;;  %v3168_v40 = vpop.permute.xlu0 %776 }
 0x1e7   : >> { %4464 = vst [vmem:[#allocation9_spill] sm:$0xff] %v3166_v21  ;;  %4465 = vst [vmem:[#allocation10_spill] sm:$0xff] %v3168_v40 }
 0x1ea   : >> { %v3170_v50 = vpop.permute.xlu1 %782  ;;  %v3174_v52 = vpop.permute.xlu0 %780 }
 0x1eb   : >> { %4466 = vst [vmem:[#allocation11_spill] sm:$0xff] %v3170_v50  ;;  %4468 = vst [vmem:[#allocation13_spill] sm:$0xff] %v3174_v52 }
 0x1ee   : >> { %v3172_v51 = vpop.permute.xlu1 %922  ;;  %v3178_v56 = vpop.permute.xlu0 %924 }
 0x1ef   : >> { %4467 = vst [vmem:[#allocation12_spill] sm:$0xff] %v3172_v51  ;;  %4470 = vst [vmem:[#allocation15_spill] sm:$0xff] %v3178_v56 }
 0x1f2   : >> { %v3176_v55 = vpop.permute.xlu1 %926  ;;  %v3182_v58 = vpop.permute.xlu0 %928 }
 0x1f3   : >> { %4469 = vst [vmem:[#allocation14_spill] sm:$0xff] %v3176_v55  ;;  %4472 = vst [vmem:[#allocation17_spill] sm:$0xff] %v3182_v58 }
 0x1f6   : >> { %v3180_v57 = vpop.permute.xlu1 %930  ;;  %v3186_v62 = vpop.permute.xlu0 %932 }
 0x1f7   : >> { %4471 = vst [vmem:[#allocation16_spill] sm:$0xff] %v3180_v57  ;;  %4474 = vst [vmem:[#allocation19_spill] sm:$0xff] %v3186_v62  ;;  %v1010_v62 = vmul.f32 %v3121_v14, %v3026_v1 }
 0x1fa   : >> { %v3184_v61 = vpop.permute.xlu1 %934  ;;  %v3190_v20 = vpop.permute.xlu0 %936 }
 0x1fb   : >> { %4473 = vst [vmem:[#allocation18_spill] sm:$0xff] %v3184_v61  ;;  %4476 = vst [vmem:[#allocation21_spill] sm:$0xff] %v3190_v20  ;;  %v1009_v61 = vmul.f32 %v3110_v9, %v3023_v0 }
 0x1fe   : >> { %v3188_v63 = vpop.permute.xlu1 %938  ;;  %v3194_v28 = vpop.permute.xlu0 %940 }
 0x1ff   : >> { %4475 = vst [vmem:[#allocation20_spill] sm:$0xff] %v3188_v63  ;;  %4478 = vst [vmem:[#allocation23_spill] sm:$0xff] %v3194_v28  ;;  %v1011_v28 = vmul.f32 %v3110_v9, %v3033_v6 }
 0x202   : >> { %v3192_v27 = vpop.permute.xlu1 %942  ;;  %v3198_v50 = vpop.permute.xlu0 %944 }
 0x203   : >> { %4477 = vst [vmem:[#allocation22_spill] sm:$0xff] %v3192_v27  ;;  %4480 = vst [vmem:[#allocation25_spill] sm:$0xff] %v3198_v50  ;;  %v1012_v50 = vmul.f32 %v3121_v14, %v3036_v7 }
 0x206   : >> { %v3196_v52 = vpop.permute.xlu1 %946  ;;  %v3202_v57 = vpop.permute.xlu0 %948 }
 0x207   : >> { %4479 = vst [vmem:[#allocation24_spill] sm:$0xff] %v3196_v52  ;;  %4482 = vst [vmem:[#allocation27_spill] sm:$0xff] %v3202_v57 }
 0x20a   : >> { %v3200_v55 = vpop.permute.xlu1 %950 }
 0x20b   : >> { %4481 = vst [vmem:[#allocation26_spill] sm:$0xff] %v3200_v55 }
 0x217   : >> { %v1037_v27 = vpop.permute.xlu0 %1036 }
 0x218   : >> { %v1059_v55 = vmul.f32 %v1037_v27, %v1011_v28  ;;  %v1060_v52 = vmul.f32 %v1037_v27, %v1012_v50  ;;  %v1016_v27 = vmul.f32 %v3121_v14, %v3056_v18 }
 0x21b   : >> { %v1033_v63 = vpop.permute.xlu1 %1032  ;;  %v1045_v24 = vpop.permute.xlu0 %1044 }
 0x21c   : >> { %v1057_v20 = vmul.f32 %v1033_v63, %v1009_v61  ;;  %v1058_v58 = vmul.f32 %v1033_v63, %v1010_v62  ;;  %v1014_v61 = vmul.f32 %v3121_v14, %v3046_v13 }
 0x21e   : >> { %1097 = vrot.lane.b32.xlu1 %v1058_v58, %s2669_s11  ;;  %1095 = vrot.lane.b32.xlu0 %v1057_v20, %s2669_s11  ;;  %v1015_v58 = vmul.f32 %v3110_v9, %v3053_v17  ;;  %v1064_v20 = vmul.f32 %v1045_v24, %v1016_v27 }
 0x21f   : >> { %v1041_v57 = vpop.permute.xlu1 %1040 }
 0x220   : >> { %v1061_v62 = vmul.f32 %v1041_v57, %v1013_v19  ;;  %v1062_v63 = vmul.f32 %v1041_v57, %v1014_v61  ;;  %v1063_v28 = vmul.f32 %v1045_v24, %v1015_v58  ;;  %v1018_v19 = vmul.f32 %v3121_v14, %v3068_v36 }
 0x221   : >> { %v2672_v14 = vmov 6   ;;  %v2674_v24 = vmov 7   ;;  %v2676_v61 = vmov 8  }
 0x222   : >> { %1101 = vrot.lane.b32.xlu1 %v1060_v52, %s2669_s11  ;;  %1099 = vrot.lane.b32.xlu0 %v1059_v55, %s2669_s11  ;;  %v1017_v52 = vmul.f32 %v3110_v9, %v3065_v25  ;;  %v2671_v9 = vmov 5  }
 0x223   : >> { %v1049_v50 = vpop.permute.xlu1 %1048 }
 0x224   : >> { %v1065_v55 = vmul.f32 %v1049_v50, %v1017_v52  ;;  %v1066_v57 = vmul.f32 %v1049_v50, %v1018_v19 }
 0x226   : >> { %1105 = vrot.lane.b32.xlu1 %v1062_v63, %s2669_s11  ;;  %1103 = vrot.lane.b32.xlu0 %v1061_v62, %s2669_s11  ;;  %v4484_v62 = vmov 0  }
 0x22a   : >> { %1109 = vrot.lane.b32.xlu1 %v1064_v20, %s2669_s11  ;;  %1107 = vrot.lane.b32.xlu0 %v1063_v28, %s2669_s11 }
 0x22e   : >> { %1113 = vrot.lane.b32.xlu1 %v1066_v57, %s2669_s11  ;;  %1111 = vrot.lane.b32.xlu0 %v1065_v55, %s2669_s11 }
 0x232   : >> { %1161 = vperm.xlu1 %2599, %v2914_v29   ;;  %1157 = vperm.xlu0 %2598, %v2907_v23  }
 0x236   : >> { %1165 = vperm.xlu1 %2599, %v2942_v35   ;;  %1169 = vperm.xlu0 %2598, %v2922_v31  }
 0x23a   : >> { %1173 = vperm.xlu1 %2599, %v2927_v32   ;;  %1177 = vperm.xlu0 %2598, %v2949_v37  }
 0x23e   : >> { %1181 = vperm.xlu1 %2599, %v2932_v33   ;;  %1185 = vperm.xlu0 %2598, %v2954_v38  }
 0x242   : >> { %2600 = vset.pattern.permute.xlu1 %v2671_v9  ;;  %2601 = vset.pattern.permute.xlu0 %v2671_v9 }
 0x243   : >> { %1318 = vperm.xlu1 %2600, %v2907_v23   ;;  %1322 = vperm.xlu0 %2601, %v2914_v29  }
 0x247   : >> { %1326 = vperm.xlu1 %2600, %v2942_v35   ;;  %1334 = vperm.xlu0 %2601, %v2927_v32  }
 0x24b   : >> { %1330 = vperm.xlu1 %2600, %v2922_v31   ;;  %1342 = vperm.xlu0 %2601, %v2932_v33  }
 0x24f   : >> { %1338 = vperm.xlu1 %2600, %v2949_v37   ;;  %2602 = vset.pattern.permute.xlu0 %v2672_v14 }
 0x250   : >> { %1479 = vperm.xlu0 %2602, %v2907_v23  }
 0x253   : >> { %1346 = vperm.xlu1 %2600, %v2954_v38  }
 0x254   : >> { %1491 = vperm.xlu0 %2602, %v2922_v31  }
 0x257   : >> { %2603 = vset.pattern.permute.xlu1 %v2672_v14 }
 0x258   : >> { %1483 = vperm.xlu1 %2603, %v2914_v29   ;;  %1499 = vperm.xlu0 %2602, %v2949_v37  }
 0x25c   : >> { %1487 = vperm.xlu1 %2603, %v2942_v35   ;;  %1507 = vperm.xlu0 %2602, %v2954_v38  }
 0x260   : >> { %1495 = vperm.xlu1 %2603, %v2927_v32   ;;  %1295 = vrot.lane.b32.xlu0 %v2959_v39, %s2673_s13 }
 0x261   : >> { %2605 = vset.pattern.permute.xlu0 %v2674_v24 }
 0x264   : >> { %1503 = vperm.xlu1 %2603, %v2932_v33   ;;  %1619 = vperm.xlu0 %2605, %v2914_v29  }
 0x268   : >> { %1293 = vrot.lane.b32.xlu1 %v2938_v34, %s2673_s13  ;;  %1631 = vperm.xlu0 %2605, %v2927_v32  }
 0x269   : >> { %2604 = vset.pattern.permute.xlu1 %v2674_v24 }
 0x26c   : >> { %1615 = vperm.xlu1 %2604, %v2907_v23   ;;  %1639 = vperm.xlu0 %2605, %v2932_v33  }
 0x270   : >> { %1623 = vperm.xlu1 %2604, %v2942_v35   ;;  %1454 = vrot.lane.b32.xlu0 %v2911_v26, %s2675_s14  ;;  %v3274_v26 = vpop.permute.xlu0 %952 }
 0x271   : >> { %2606 = vset.pattern.permute.xlu0 %v2676_v61  ;;  %4483 = vst [vmem:[#allocation28_spill] sm:$0xff] %v3274_v26 }
 0x274   : >> { %1627 = vperm.xlu1 %2604, %v2922_v31   ;;  %1776 = vperm.xlu0 %2606, %v2907_v23   ;;  %v3279_v23 = vpop.permute.xlu0 %1083 }
 0x275   : >> { %4485 = vst [vmem:[#allocation29_spill] sm:$0xff] %v3279_v23 }
 0x278   : >> { %1635 = vperm.xlu1 %2604, %v2949_v37   ;;  %1788 = vperm.xlu0 %2606, %v2922_v31   ;;  %v3281_v31 = vpop.permute.xlu1 %1085 }
 0x279   : >> { %4486 = vst [vmem:[#allocation30_spill] sm:$0xff] %v3281_v31 }
 0x27c   : >> { %1643 = vperm.xlu1 %2604, %v2954_v38   ;;  %1796 = vperm.xlu0 %2606, %v2949_v37   ;;  %v3288_v63 = vpop.permute.xlu1 %1089 }
 0x27d   : >> { %4488 = vst [vmem:[#allocation32_spill] sm:$0xff] %v3288_v63 }
 0x280   : >> { %1804 = vperm.xlu0 %2606, %v2954_v38   ;;  %1456 = vrot.lane.b32.xlu1 %v2918_v30, %s2675_s14  ;;  %v3286_v30 = vpop.permute.xlu0 %1087  ;;  %v3294_v58 = vpop.permute.xlu1 %1093 }
 0x281   : >> { %2607 = vset.pattern.permute.xlu1 %v2676_v61  ;;  %4487 = vst [vmem:[#allocation31_spill] sm:$0xff] %v3286_v30  ;;  %4490 = vst [vmem:[#allocation34_spill] sm:$0xff] %v3294_v58 }
 0x284   : >> { %2608 = vset.pattern.permute.xlu0 %v4484_v62  ;;  %1780 = vperm.xlu1 %2607, %v2914_v29   ;;  %v3292_v29 = vpop.permute.xlu0 %1091 }
 0x285   : >> { %628 = vperm.xlu0 %2608, %v2942_v35   ;;  %4489 = vst [vmem:[#allocation33_spill] sm:$0xff] %v3292_v29 }
 0x288   : >> { %1784 = vperm.xlu1 %2607, %v2942_v35  }
 0x289   : >> { %643 = vperm.xlu0 %2608, %v2949_v37  }
 0x28c   : >> { %1792 = vperm.xlu1 %2607, %v2927_v32  }
 0x28d   : >> { %653 = vperm.xlu0 %2608, %v2954_v38  }
 0x290   : >> { %1800 = vperm.xlu1 %2607, %v2932_v33   ;;  %v3298_v35 = vpop.permute.xlu0 %1095  ;;  %v3300_v32 = vpop.permute.xlu1 %1097 }
 0x291   : >> { %1753 = vrot.lane.b32.xlu0 %v2959_v39, %s2677_s15  ;;  %4491 = vst [vmem:[#allocation35_spill] sm:$0xff] %v3298_v35  ;;  %4492 = vst [vmem:[#allocation36_spill] sm:$0xff] %v3300_v32 }
 0x294   : >> { %1751 = vrot.lane.b32.xlu1 %v2938_v34, %s2677_s15  ;;  %v3303_v37 = vpop.permute.xlu0 %1099  ;;  %v3305_v38 = vpop.permute.xlu1 %1101 }
 0x295   : >> { %2609 = vset.pattern.permute.xlu1 %v4484_v62  ;;  %4493 = vst [vmem:[#allocation37_spill] sm:$0xff] %v3303_v37  ;;  %4494 = vst [vmem:[#allocation38_spill] sm:$0xff] %v3305_v38 }
 0x298   : >> { %v3307_v33 = vpop.permute.xlu0 %1103  ;;  %v3309_v27 = vpop.permute.xlu1 %1105 }
 0x299   : >> { %4495 = vst [vmem:[#allocation39_spill] sm:$0xff] %v3307_v33  ;;  %4496 = vst [vmem:[#allocation40_spill] sm:$0xff] %v3309_v27 }
 0x29c   : >> { %v3311_v28 = vpop.permute.xlu0 %1107  ;;  %v3313_v20 = vpop.permute.xlu1 %1109 }
 0x29d   : >> { %4497 = vst [vmem:[#allocation41_spill] sm:$0xff] %v3311_v28  ;;  %4498 = vst [vmem:[#allocation42_spill] sm:$0xff] %v3313_v20 }
 0x2a0   : >> { %v3315_v39 = vpop.permute.xlu0 %1111  ;;  %v3317_v34 = vpop.permute.xlu1 %1113 }
 0x2a1   : >> { %4499 = vst [vmem:[#allocation43_spill] sm:$0xff] %v3315_v39  ;;  %4500 = vst [vmem:[#allocation44_spill] sm:$0xff] %v3317_v34 }
 0x2b1   : >> { %v1158_v50 = vpop.permute.xlu0 %1157  ;;  %v1162_v52 = vpop.permute.xlu1 %1161 }
 0x2b2   : >> { %v1188_v19 = vmul.f32 %v1158_v50, %v2993_v48  ;;  %v1189_v55 = vmul.f32 %v1158_v50, %v2996_v49  ;;  %v1190_v14 = vmul.f32 %v1162_v52, %v3001_v53  ;;  %v1191_v24 = vmul.f32 %v1162_v52, %v3004_v54 }
 0x2b4   : >> { %1222 = vrot.lane.b32.xlu0 %v1189_v55, %s2678_s16  ;;  %1220 = vrot.lane.b32.xlu1 %v1188_v19, %s2678_s16 }
 0x2b5   : >> { %v1170_v57 = vpop.permute.xlu0 %1169  ;;  %v1166_v9 = vpop.permute.xlu1 %1165 }
 0x2b6   : >> { %v1192_v39 = vmul.f32 %v1166_v9, %v3013_v59  ;;  %v1193_v50 = vmul.f32 %v1166_v9, %v3016_v60  ;;  %v1194_v34 = vmul.f32 %v1170_v57, %v3023_v0  ;;  %v1195_v52 = vmul.f32 %v1170_v57, %v3026_v1 }
 0x2b8   : >> { %1226 = vrot.lane.b32.xlu0 %v1191_v24, %s2678_s16  ;;  %1224 = vrot.lane.b32.xlu1 %v1190_v14, %s2678_s16 }
 0x2b9   : >> { %v1178_v61 = vpop.permute.xlu0 %1177  ;;  %v1174_v62 = vpop.permute.xlu1 %1173 }
 0x2ba   : >> { %v1196_v14 = vmul.f32 %v1174_v62, %v3033_v6  ;;  %v1197_v24 = vmul.f32 %v1174_v62, %v3036_v7 }
 0x2bc   : >> { %1230 = vrot.lane.b32.xlu0 %v1193_v50, %s2678_s16  ;;  %1228 = vrot.lane.b32.xlu1 %v1192_v39, %s2678_s16  ;;  %v1198_v39 = vmul.f32 %v1178_v61, %v3043_v12  ;;  %v1199_v50 = vmul.f32 %v1178_v61, %v3046_v13 }
 0x2bd   : >> { %v1186_v19 = vpop.permute.xlu0 %1185  ;;  %v1182_v55 = vpop.permute.xlu1 %1181 }
 0x2be   : >> { %v1201_v62 = vmul.f32 %v1182_v55, %v3056_v18  ;;  %v1202_v61 = vmul.f32 %v1186_v19, %v3065_v25 }
 0x2c0   : >> { %1234 = vrot.lane.b32.xlu0 %v1195_v52, %s2678_s16  ;;  %1232 = vrot.lane.b32.xlu1 %v1194_v34, %s2678_s16  ;;  %v1200_v34 = vmul.f32 %v1182_v55, %v3053_v17 }
 0x2c2   : >> { %v1323_v33 = vpop.permute.xlu0 %1322  ;;  %v1319_v9 = vpop.permute.xlu1 %1318 }
 0x2c4   : >> { %1238 = vrot.lane.b32.xlu0 %v1197_v24, %s2678_s16  ;;  %1236 = vrot.lane.b32.xlu1 %v1196_v14, %s2678_s16  ;;  %v1203_v14 = vmul.f32 %v1186_v19, %v3068_v36 }
 0x2c6   : >> { %v3341_v27 = vpop.permute.xlu0 %1334  ;;  %v1327_v57 = vpop.permute.xlu1 %1326 }
 0x2c8   : >> { %1242 = vrot.lane.b32.xlu0 %v1199_v50, %s2678_s16  ;;  %1240 = vrot.lane.b32.xlu1 %v1198_v39, %s2678_s16 }
 0x2ca   : >> { %v3347_v52 = vpop.permute.xlu0 %1342  ;;  %v1331_v24 = vpop.permute.xlu1 %1330 }
 0x2cc   : >> { %1246 = vrot.lane.b32.xlu0 %v1201_v62, %s2678_s16  ;;  %1244 = vrot.lane.b32.xlu1 %v1200_v34, %s2678_s16 }
 0x2ce   : >> { %v1339_v28 = vpop.permute.xlu1 %1338 }
 0x2cf   : >> { %v3353_v20 = vpop.permute.xlu0 %1479 }
 0x2d0   : >> { %1250 = vrot.lane.b32.xlu0 %v1203_v14, %s2678_s16  ;;  %1248 = vrot.lane.b32.xlu1 %v1202_v61, %s2678_s16 }
 0x2d2   : >> { %v3357_v39 = vpop.permute.xlu1 %1346 }
 0x2d3   : >> { %v3359_v55 = vpop.permute.xlu0 %1491 }
 0x2d7   : >> { %v3361_v50 = vpop.permute.xlu1 %1483  ;;  %v3363_v62 = vpop.permute.xlu0 %1499 }
 0x2db   : >> { %v3365_v34 = vpop.permute.xlu1 %1487  ;;  %v3369_v19 = vpop.permute.xlu0 %1507 }
 0x2df   : >> { %v3367_v29 = vpop.permute.xlu1 %1495  ;;  %v1296_v14 = vpop.permute.xlu0 %1295 }
 0x2e3   : >> { %v3371_v58 = vpop.permute.xlu1 %1503  ;;  %v3380_v31 = vpop.permute.xlu0 %1619 }
 0x2e7   : >> { %v1294_v37 = vpop.permute.xlu1 %1293 }
 0x2e8   : >> { %v1301_v61 = vmul.f32 %v1294_v37, %v2993_v48  ;;  %v1298_v38 = vsel %vm1297_vm6, %v1294_v37, %v1296_v14  ;;  %v1303_v26 = vmul.f32 %v1294_v37, %v3001_v53  ;;  %v1305_v14 = vmul.f32 %v1294_v37, %v3013_v59 }
 0x2e9   : >> { %v1302_v35 = vmul.f32 %v1298_v38, %v2996_v49  ;;  %v1304_v23 = vmul.f32 %v1298_v38, %v3004_v54  ;;  %v1306_v8 = vmul.f32 %v1298_v38, %v3016_v60 }
 0x2ea   : >> { %v1349_v32 = vmul.f32 %v1319_v9, %v1301_v61  ;;  %v1351_v51 = vmul.f32 %v1323_v33, %v1303_v26  ;;  %v1308_v26 = vmul.f32 %v1298_v38, %v3026_v1 }
 0x2eb   : >> { %v3376_v30 = vpop.permute.xlu1 %1615  ;;  %v1350_v63 = vmul.f32 %v1319_v9, %v1302_v35  ;;  %v1352_v61 = vmul.f32 %v1323_v33, %v1304_v23  ;;  %v1353_v35 = vmul.f32 %v1327_v57, %v1305_v14  ;;  %v1307_v9 = vmul.f32 %v1294_v37, %v3023_v0 }
 0x2ec   : >> { %1381 = vrot.lane.b32.xlu1 %v1349_v32, %s2679_s17  ;;  %v3390_v32 = vpop.permute.xlu0 %1631  ;;  %v1309_v33 = vmul.f32 %v1294_v37, %v3033_v6  ;;  %v1310_v14 = vmul.f32 %v1298_v38, %v3036_v7 }
 0x2ed   : >> { %1383 = vrot.lane.b32.xlu0 %v1350_v63, %s2679_s17  ;;  %v1354_v63 = vmul.f32 %v1327_v57, %v1306_v8  ;;  %v1355_v23 = vmul.f32 %v1331_v24, %v1307_v9  ;;  %v1311_v57 = vmul.f32 %v1294_v37, %v3043_v12 }
 0x2ee   : >> { %v1357_v8 = vmul.f32 %v3341_v27, %v1309_v33  ;;  %v1358_v9 = vmul.f32 %v3341_v27, %v1310_v14  ;;  %v1314_v33 = vmul.f32 %v1298_v38, %v3056_v18  ;;  %v1315_v14 = vmul.f32 %v1294_v37, %v3065_v25 }
 0x2ef   : >> { %v3384_v56 = vpop.permute.xlu1 %1623 }
 0x2f0   : >> { %1385 = vrot.lane.b32.xlu1 %v1351_v51, %s2679_s17  ;;  %v3402_v40 = vpop.permute.xlu0 %1639 }
 0x2f1   : >> { %1387 = vrot.lane.b32.xlu0 %v1352_v61, %s2679_s17  ;;  %v1356_v61 = vmul.f32 %v1331_v24, %v1308_v26  ;;  %v1359_v24 = vmul.f32 %v1339_v28, %v1311_v57  ;;  %v1313_v26 = vmul.f32 %v1294_v37, %v3053_v17  ;;  %v1316_v57 = vmul.f32 %v1298_v38, %v3068_v36 }
 0x2f3   : >> { %v3392_v10 = vpop.permute.xlu1 %1627  ;;  %v1361_v27 = vmul.f32 %v3347_v52, %v1313_v26  ;;  %v1364_v26 = vmul.f32 %v3357_v39, %v1316_v57 }
 0x2f4   : >> { %1389 = vrot.lane.b32.xlu1 %v1353_v35, %s2679_s17 }
 0x2f5   : >> { %1391 = vrot.lane.b32.xlu0 %v1354_v63, %s2679_s17  ;;  %v1312_v63 = vmul.f32 %v1298_v38, %v3046_v13 }
 0x2f7   : >> { %v3398_v51 = vpop.permute.xlu1 %1635 }
 0x2f8   : >> { %1393 = vrot.lane.b32.xlu1 %v1355_v23, %s2679_s17  ;;  %v3414_v23 = vpop.permute.xlu0 %1454 }
 0x2f9   : >> { %1395 = vrot.lane.b32.xlu0 %v1356_v61, %s2679_s17  ;;  %v1360_v61 = vmul.f32 %v1339_v28, %v1312_v63  ;;  %v1363_v63 = vmul.f32 %v3357_v39, %v1315_v14  ;;  %v1464_v38 = vmul.f32 %v3414_v23, %v3001_v53 }
 0x2fb   : >> { %v3407_v35 = vpop.permute.xlu1 %1643  ;;  %v1512_v39 = vmul.f32 %v3361_v50, %v1464_v38 }
 0x2fc   : >> { %1397 = vrot.lane.b32.xlu1 %v1357_v8, %s2679_s17  ;;  %v1362_v8 = vmul.f32 %v3347_v52, %v1314_v33  ;;  %v3425_v28 = vpop.permute.xlu0 %1776 }
 0x2fd   : >> { %1399 = vrot.lane.b32.xlu0 %v1358_v9, %s2679_s17 }
 0x2ff   : >> { %v1457_v21 = vpop.permute.xlu1 %1456 }
 0x300   : >> { %1401 = vrot.lane.b32.xlu1 %v1359_v24, %s2679_s17  ;;  %v1459_v9 = vsel %vm1458_vm7, %v3414_v23, %v1457_v21  ;;  %v1462_v24 = vmul.f32 %v3414_v23, %v2993_v48  ;;  %v3438_v52 = vpop.permute.xlu0 %1788 }
 0x301   : >> { %1403 = vrot.lane.b32.xlu0 %v1360_v61, %s2679_s17  ;;  %v1463_v37 = vmul.f32 %v1459_v9, %v2996_v49  ;;  %v1465_v33 = vmul.f32 %v1459_v9, %v3004_v54 }
 0x302   : >> { %v1510_v21 = vmul.f32 %v3353_v20, %v1462_v24 }
 0x303   : >> { %v1511_v61 = vmul.f32 %v3353_v20, %v1463_v37  ;;  %v1513_v14 = vmul.f32 %v3361_v50, %v1465_v33  ;;  %v3458_v37 = vpop.permute.xlu1 %1780  ;;  %v1471_v33 = vmul.f32 %v1459_v9, %v3036_v7 }
 0x304   : >> { %1405 = vrot.lane.b32.xlu1 %v1361_v27, %s2679_s17  ;;  %v1466_v27 = vmul.f32 %v3414_v23, %v3013_v59  ;;  %v3450_v57 = vpop.permute.xlu0 %1796 }
 0x305   : >> { %1407 = vrot.lane.b32.xlu0 %v1362_v8, %s2679_s17  ;;  %v1467_v8 = vmul.f32 %v1459_v9, %v3016_v60 }
 0x306   : >> { %v1514_v20 = vmul.f32 %v3365_v34, %v1466_v27  ;;  %v1472_v27 = vmul.f32 %v3414_v23, %v3043_v12 }
 0x307   : >> { %v1515_v24 = vmul.f32 %v3365_v34, %v1467_v8  ;;  %v3471_v34 = vpop.permute.xlu1 %1784  ;;  %v1473_v8 = vmul.f32 %v1459_v9, %v3046_v13 }
 0x308   : >> { %1409 = vrot.lane.b32.xlu1 %v1363_v63, %s2679_s17  ;;  %v1468_v63 = vmul.f32 %v3414_v23, %v3023_v0  ;;  %v3465_v38 = vpop.permute.xlu0 %1804 }
 0x309   : >> { %1411 = vrot.lane.b32.xlu0 %v1364_v26, %s2679_s17  ;;  %v1469_v26 = vmul.f32 %v1459_v9, %v3026_v1 }
 0x30a   : >> { %v1516_v50 = vmul.f32 %v3359_v55, %v1468_v63  ;;  %v1474_v63 = vmul.f32 %v3414_v23, %v3053_v17 }
 0x30c   : >> { %1542 = vrot.lane.b32.xlu1 %v1510_v21, %s2680_s21  ;;  %v1470_v21 = vmul.f32 %v3414_v23, %v3033_v6 }
 0x30d   : >> { %1544 = vrot.lane.b32.xlu0 %v1511_v61, %s2680_s21  ;;  %v1517_v61 = vmul.f32 %v3359_v55, %v1469_v26  ;;  %v3479_v55 = vpop.permute.xlu0 %628  ;;  %v1475_v26 = vmul.f32 %v1459_v9, %v3056_v18 }
 0x310   : >> { %1546 = vrot.lane.b32.xlu1 %v1512_v39, %s2680_s21  ;;  %v1518_v39 = vmul.f32 %v3367_v29, %v1470_v21  ;;  %v1476_v21 = vmul.f32 %v3414_v23, %v3065_v25  ;;  %v1647_v23 = vmul.f32 %v3376_v30, %v2996_v49  ;;  %v1650_v49 = vmul.f32 %v3384_v56, %v3013_v59 }
 0x311   : >> { %1548 = vrot.lane.b32.xlu0 %v1513_v14, %s2680_s21  ;;  %v1519_v14 = vmul.f32 %v3367_v29, %v1471_v33  ;;  %v1522_v29 = vmul.f32 %v3371_v58, %v1474_v63  ;;  %v1523_v33 = vmul.f32 %v3371_v58, %v1475_v26  ;;  %v1646_v58 = vmul.f32 %v3376_v30, %v2993_v48 }
 0x312   : >> { %v1649_v63 = vmul.f32 %v3380_v31, %v3004_v54  ;;  %v1651_v30 = vmul.f32 %v3384_v56, %v3016_v60  ;;  %v1654_v59 = vmul.f32 %v3390_v32, %v3033_v6  ;;  %v1655_v60 = vmul.f32 %v3390_v32, %v3036_v7 }
 0x313   : >> { %v1658_v6 = vmul.f32 %v3402_v40, %v3053_v17  ;;  %v1659_v32 = vmul.f32 %v3402_v40, %v3056_v18  ;;  %v3574_v17 = vld [vmem:[%s2990_s7] sm:$0xff]  ;;  %v1661_v18 = vmul.f32 %v3407_v35, %v3068_v36  ;;  %v3581_v40 = vld [vmem:[%s2990_s7 + $0x8] sm:$0xff] }
 0x314   : >> { %1550 = vrot.lane.b32.xlu1 %v1514_v20, %s2680_s21  ;;  %v1520_v20 = vmul.f32 %v3363_v62, %v1472_v27  ;;  %v1524_v27 = vmul.f32 %v3369_v19, %v1476_v21 }
 0x315   : >> { %1552 = vrot.lane.b32.xlu0 %v1515_v24, %s2680_s21  ;;  %v1521_v24 = vmul.f32 %v3363_v62, %v1473_v8 }
 0x318   : >> { %1554 = vrot.lane.b32.xlu1 %v1516_v50, %s2680_s21  ;;  %v3487_v50 = vpop.permute.xlu1 %1792 }
 0x319   : >> { %1556 = vrot.lane.b32.xlu0 %v1517_v61, %s2680_s21  ;;  %v3494_v61 = vpop.permute.xlu0 %643 }
 0x31c   : >> { %1558 = vrot.lane.b32.xlu1 %v1518_v39, %s2680_s21  ;;  %v1477_v39 = vmul.f32 %v1459_v9, %v3068_v36  ;;  %v3500_v62 = vpop.permute.xlu1 %1800 }
 0x31d   : >> { %1560 = vrot.lane.b32.xlu0 %v1519_v14, %s2680_s21  ;;  %v3505_v8 = vpop.permute.xlu0 %653 }
 0x31e   : >> { %v1525_v14 = vmul.f32 %v3369_v19, %v1477_v39  ;;  %v1648_v19 = vmul.f32 %v3380_v31, %v3001_v53  ;;  %v1652_v53 = vmul.f32 %v3392_v10, %v3023_v0  ;;  %v1653_v31 = vmul.f32 %v3392_v10, %v3026_v1 }
 0x31f   : >> { %v1656_v1 = vmul.f32 %v3398_v51, %v3043_v12  ;;  %v1657_v10 = vmul.f32 %v3398_v51, %v3046_v13  ;;  %v1660_v13 = vmul.f32 %v3407_v35, %v3065_v25 }
 0x320   : >> { %1562 = vrot.lane.b32.xlu1 %v1520_v20, %s2680_s21  ;;  %v3512_v9 = vpop.permute.xlu1 %1751 }
 0x321   : >> { %1564 = vrot.lane.b32.xlu0 %v1521_v24, %s2680_s21  ;;  %v1754_v20 = vpop.permute.xlu0 %1753  ;;  %v1759_v51 = vmul.f32 %v3574_v17, %v3512_v9 }
 0x322   : >> { %v3568_v12 = vsel %vm1755_vm8, %v3512_v9, %v1754_v20 }
 0x323   : >> { %v1760_v21 = vmul.f32 %v3581_v40, %v3568_v12  ;;  %v1807_v25 = vmul.f32 %v3425_v28, %v1759_v51  ;;  %v3643_v51 = vld [vmem:[%s2990_s7 + $0x40] sm:$0xff] }
 0x324   : >> { %1566 = vrot.lane.b32.xlu1 %v1522_v29, %s2680_s21 }
 0x325   : >> { %1568 = vrot.lane.b32.xlu0 %v1523_v33, %s2680_s21  ;;  %v1808_v35 = vmul.f32 %v3425_v28, %v1760_v21  ;;  %v3649_v21 = vld [vmem:[%s2990_s7 + $0x48] sm:$0xff] }
 0x326   : >> { %v3520_v24 = vpop.permute.xlu1 %1220  ;;  %v3523_v48 = vpop.permute.xlu0 %1222 }
 0x328   : >> { %1570 = vrot.lane.b32.xlu1 %v1524_v27, %s2680_s21  ;;  %v3593_v27 = vld [vmem:[%s2990_s7 + $0x10] sm:$0xff] }
 0x329   : >> { %1572 = vrot.lane.b32.xlu0 %v1525_v14, %s2680_s21  ;;  %v1761_v36 = vmul.f32 %v3593_v27, %v3512_v9  ;;  %v3599_v14 = vld [vmem:[%s2990_s7 + $0x18] sm:$0xff] }
 0x32a   : >> { %v3534_v54 = vpop.permute.xlu1 %1224  ;;  %v3538_v26 = vpop.permute.xlu0 %1226 }
 0x32b   : >> { %v1809_v20 = vmul.f32 %v3458_v37, %v1761_v36 }
 0x32c   : >> { %1678 = vrot.lane.b32.xlu1 %v1646_v58, %s2681_s23  ;;  %v1762_v58 = vmul.f32 %v3599_v14, %v3568_v12 }
 0x32d   : >> { %1680 = vrot.lane.b32.xlu0 %v1647_v23, %s2681_s23 }
 0x32e   : >> { %v3546_v56 = vpop.permute.xlu1 %1228  ;;  %v3549_v0 = vpop.permute.xlu0 %1230 }
 0x330   : >> { %1682 = vrot.lane.b32.xlu1 %v1648_v19, %s2681_s23  ;;  %v3609_v19 = vld [vmem:[%s2990_s7 + $0x20] sm:$0xff] }
 0x331   : >> { %1684 = vrot.lane.b32.xlu0 %v1649_v63, %s2681_s23  ;;  %v1763_v28 = vmul.f32 %v3609_v19, %v3512_v9 }
 0x332   : >> { %v3560_v7 = vpop.permute.xlu1 %1232  ;;  %v3564_v29 = vpop.permute.xlu0 %1234 }
 0x333   : >> { %4501 = vst [vmem:[#allocation45_spill] sm:$0xff] %v3560_v7  ;;  %4502 = vst [vmem:[#allocation46_spill] sm:$0xff] %v3564_v29  ;;  %v4557_v29 = vld [vmem:[#allocation19_spill] sm:$0xff] }
 0x334   : >> { %1686 = vrot.lane.b32.xlu1 %v1650_v49, %s2681_s23  ;;  %v1810_v49 = vmul.f32 %v3458_v37, %v1762_v58  ;;  %v3659_v58 = vld [vmem:[%s2990_s7 + $0x50] sm:$0xff] }
 0x335   : >> { %1688 = vrot.lane.b32.xlu0 %v1651_v30, %s2681_s23  ;;  %v3617_v30 = vld [vmem:[%s2990_s7 + $0x28] sm:$0xff] }
 0x336   : >> { %v3585_v33 = vpop.permute.xlu1 %1236  ;;  %v3588_v39 = vpop.permute.xlu0 %1238 }
 0x337   : >> { %4503 = vst [vmem:[#allocation47_spill] sm:$0xff] %v3585_v33  ;;  %4504 = vst [vmem:[#allocation48_spill] sm:$0xff] %v3588_v39 }
 0x338   : >> { %1690 = vrot.lane.b32.xlu1 %v1652_v53, %s2681_s23  ;;  %v1764_v53 = vmul.f32 %v3617_v30, %v3568_v12 }
 0x339   : >> { %1692 = vrot.lane.b32.xlu0 %v1653_v31, %s2681_s23  ;;  %v1811_v31 = vmul.f32 %v3471_v34, %v1763_v28 }
 0x33a   : >> { %v3605_v23 = vpop.permute.xlu1 %1240  ;;  %v3613_v63 = vpop.permute.xlu0 %1242  ;;  %v1812_v37 = vmul.f32 %v3471_v34, %v1764_v53  ;;  %v1767_v34 = vmul.f32 %v3643_v51, %v3512_v9 }
 0x33b   : >> { %4505 = vst [vmem:[#allocation49_spill] sm:$0xff] %v3605_v23  ;;  %4506 = vst [vmem:[#allocation50_spill] sm:$0xff] %v3613_v63 }
 0x33c   : >> { %1694 = vrot.lane.b32.xlu1 %v1654_v59, %s2681_s23  ;;  %v3625_v59 = vld [vmem:[%s2990_s7 + $0x30] sm:$0xff] }
 0x33d   : >> { %1696 = vrot.lane.b32.xlu0 %v1655_v60, %s2681_s23  ;;  %v1765_v60 = vmul.f32 %v3625_v59, %v3512_v9 }
 0x340   : >> { %1698 = vrot.lane.b32.xlu1 %v1656_v1, %s2681_s23  ;;  %v3631_v1 = vld [vmem:[%s2990_s7 + $0x38] sm:$0xff] }
 0x341   : >> { %1700 = vrot.lane.b32.xlu0 %v1657_v10, %s2681_s23  ;;  %v1766_v10 = vmul.f32 %v3631_v1, %v3568_v12 }
 0x344   : >> { %1702 = vrot.lane.b32.xlu1 %v1658_v6, %s2681_s23  ;;  %v3635_v6 = vpop.permute.xlu1 %1244 }
 0x345   : >> { %1704 = vrot.lane.b32.xlu0 %v1659_v32, %s2681_s23  ;;  %4507 = vst [vmem:[#allocation51_spill] sm:$0xff] %v3635_v6  ;;  %v3638_v32 = vpop.permute.xlu0 %1246 }
 0x346   : >> { %4508 = vst [vmem:[#allocation52_spill] sm:$0xff] %v3638_v32 }
 0x348   : >> { %1706 = vrot.lane.b32.xlu1 %v1660_v13, %s2681_s23  ;;  %v1813_v13 = vmul.f32 %v3438_v52, %v1765_v60  ;;  %v3655_v36 = vpop.permute.xlu1 %1248 }
 0x349   : >> { %1708 = vrot.lane.b32.xlu0 %v1661_v18, %s2681_s23  ;;  %v1814_v18 = vmul.f32 %v3438_v52, %v1766_v10  ;;  %4509 = vst [vmem:[#allocation53_spill] sm:$0xff] %v3655_v36  ;;  %v1769_v52 = vmul.f32 %v3659_v58, %v3512_v9 }
 0x34b   : >> { %v1817_v60 = vmul.f32 %v3450_v57, %v1769_v52  ;;  %v2640_v52 = vld [vmem:[%s2990_s7 + $0x70] sm:$0xff] }
 0x34c   : >> { %1839 = vrot.lane.b32.xlu1 %v1807_v25, %s2682_s24  ;;  %v1768_v25 = vmul.f32 %v3649_v21, %v3568_v12 }
 0x34d   : >> { %1841 = vrot.lane.b32.xlu0 %v1808_v35, %s2682_s24  ;;  %v1815_v35 = vmul.f32 %v3487_v50, %v1767_v34  ;;  %v3682_v34 = vld [vmem:[%s2990_s7 + $0x68] sm:$0xff] }
 0x34e   : >> { %v1816_v28 = vmul.f32 %v3487_v50, %v1768_v25 }
 0x350   : >> { %1843 = vrot.lane.b32.xlu1 %v1809_v20, %s2682_s24  ;;  %v3663_v20 = vpop.permute.xlu0 %1250 }
 0x351   : >> { %1845 = vrot.lane.b32.xlu0 %v1810_v49, %s2682_s24  ;;  %4510 = vst [vmem:[#allocation54_spill] sm:$0xff] %v3663_v20  ;;  %v3667_v49 = vld [vmem:[%s2990_s7 + $0x58] sm:$0xff] }
 0x352   : >> { %v1770_v53 = vmul.f32 %v3667_v49, %v3568_v12 }
 0x354   : >> { %1847 = vrot.lane.b32.xlu1 %v1811_v31, %s2682_s24  ;;  %v1818_v50 = vmul.f32 %v3450_v57, %v1770_v53  ;;  %v2641_v53 = vld [vmem:[%s2990_s7 + $0x78] sm:$0xff] }
 0x355   : >> { %1849 = vrot.lane.b32.xlu0 %v1812_v37, %s2682_s24  ;;  %v2638_v37 = vld [vmem:[%s2990_s7 + $0x60] sm:$0xff]  ;;  %v1774_v20 = vmul.f32 %v2641_v53, %v3568_v12 }
 0x356   : >> { %v1771_v10 = vmul.f32 %v2638_v37, %v3512_v9 }
 0x358   : >> { %1851 = vrot.lane.b32.xlu1 %v1813_v13, %s2682_s24 }
 0x359   : >> { %1853 = vrot.lane.b32.xlu0 %v1814_v18, %s2682_s24  ;;  %v1772_v18 = vmul.f32 %v3682_v34, %v3568_v12 }
 0x35b   : >> { %v1820_v57 = vmul.f32 %v3500_v62, %v1772_v18 }
 0x35c   : >> { %1855 = vrot.lane.b32.xlu1 %v1815_v35, %s2682_s24  ;;  %v1819_v35 = vmul.f32 %v3500_v62, %v1771_v10  ;;  %v1822_v10 = vmul.f32 %v3465_v38, %v1774_v20 }
 0x35d   : >> { %1857 = vrot.lane.b32.xlu0 %v1816_v28, %s2682_s24  ;;  %v1773_v28 = vmul.f32 %v2640_v52, %v3512_v9 }
 0x35e   : >> { %v3673_v31 = vpop.permute.xlu1 %1381 }
 0x35f   : >> { %v3678_v13 = vpop.permute.xlu0 %1383 }
 0x360   : >> { %1859 = vrot.lane.b32.xlu1 %v1817_v60, %s2682_s24 }
 0x361   : >> { %1861 = vrot.lane.b32.xlu0 %v1818_v50, %s2682_s24  ;;  %v1821_v50 = vmul.f32 %v3465_v38, %v1773_v28 }
 0x362   : >> { %v3688_v25 = vpop.permute.xlu1 %1385 }
 0x363   : >> { %v3693_v36 = vpop.permute.xlu0 %1387 }
 0x364   : >> { %1863 = vrot.lane.b32.xlu1 %v1819_v35, %s2682_s24 }
 0x365   : >> { %1865 = vrot.lane.b32.xlu0 %v1820_v57, %s2682_s24 }
 0x366   : >> { %v3700_v60 = vpop.permute.xlu1 %1389 }
 0x367   : >> { %v3703_v6 = vpop.permute.xlu0 %1391 }
 0x368   : >> { %1867 = vrot.lane.b32.xlu1 %v1821_v50, %s2682_s24 }
 0x369   : >> { %1869 = vrot.lane.b32.xlu0 %v1822_v10, %s2682_s24 }
 0x36a   : >> { %v3708_v62 = vpop.permute.xlu1 %1393 }
 0x36b   : >> { %4511 = vst [vmem:[#allocation55_spill] sm:$0xff] %v3708_v62  ;;  %v3710_v9 = vpop.permute.xlu0 %1395 }
 0x36c   : >> { %4512 = vst [vmem:[#allocation56_spill] sm:$0xff] %v3710_v9 }
 0x36e   : >> { %v3712_v12 = vpop.permute.xlu1 %1397 }
 0x36f   : >> { %4513 = vst [vmem:[#allocation57_spill] sm:$0xff] %v3712_v12  ;;  %v3714_v18 = vpop.permute.xlu0 %1399 }
 0x370   : >> { %4514 = vst [vmem:[#allocation58_spill] sm:$0xff] %v3714_v18 }
 0x372   : >> { %v3716_v35 = vpop.permute.xlu1 %1401 }
 0x373   : >> { %4515 = vst [vmem:[#allocation59_spill] sm:$0xff] %v3716_v35  ;;  %v3718_v57 = vpop.permute.xlu0 %1403 }
 0x374   : >> { %4516 = vst [vmem:[#allocation60_spill] sm:$0xff] %v3718_v57 }
 0x376   : >> { %v3720_v28 = vpop.permute.xlu1 %1405 }
 0x377   : >> { %4517 = vst [vmem:[#allocation61_spill] sm:$0xff] %v3720_v28  ;;  %v3722_v32 = vpop.permute.xlu0 %1407 }
 0x378   : >> { %4518 = vst [vmem:[#allocation62_spill] sm:$0xff] %v3722_v32 }
 0x37a   : >> { %v3724_v38 = vpop.permute.xlu1 %1409 }
 0x37b   : >> { %4519 = vst [vmem:[#allocation63_spill] sm:$0xff] %v3724_v38  ;;  %v3726_v20 = vpop.permute.xlu0 %1411 }
 0x37c   : >> { %4520 = vst [vmem:[#allocation64_spill] sm:$0xff] %v3726_v20 }
 0x37e   : >> { %v3728_v50 = vpop.permute.xlu1 %1542 }
 0x37f   : >> { %v3730_v10 = vpop.permute.xlu0 %1544 }
 0x382   : >> { %v3732_v23 = vpop.permute.xlu1 %1546 }
 0x383   : >> { %v3734_v63 = vpop.permute.xlu0 %1548 }
 0x386   : >> { %v3736_v12 = vpop.permute.xlu1 %1550 }
 0x387   : >> { %4521 = vst [vmem:[#allocation65_spill] sm:$0xff] %v3736_v12  ;;  %v3738_v35 = vpop.permute.xlu0 %1552 }
 0x388   : >> { %4522 = vst [vmem:[#allocation66_spill] sm:$0xff] %v3738_v35 }
 0x38a   : >> { %v3740_v57 = vpop.permute.xlu1 %1554 }
 0x38b   : >> { %4523 = vst [vmem:[#allocation67_spill] sm:$0xff] %v3740_v57  ;;  %v3742_v28 = vpop.permute.xlu0 %1556  ;;  %v597_v57 = vsel %vm596_vm9, %v2981_v45, %v2987_v47  ;;  %v608_v47 = vmul.f32 %v3643_v51, %v2981_v45 }
 0x38c   : >> { %4524 = vst [vmem:[#allocation68_spill] sm:$0xff] %v3742_v28  ;;  %v605_v51 = vmul.f32 %v3617_v30, %v597_v57  ;;  %v785_v30 = vsel %vm784_vm10, %v3142_v2, %v3144_v3  ;;  %v789_v2 = vsel %vm784_vm10, %v3158_v15, %v3160_v16 }
 0x38e   : >> { %v3744_v32 = vpop.permute.xlu1 %1558 }
 0x38f   : >> { %4525 = vst [vmem:[#allocation69_spill] sm:$0xff] %v3744_v32  ;;  %v3746_v38 = vpop.permute.xlu0 %1560 }
 0x390   : >> { %4526 = vst [vmem:[#allocation70_spill] sm:$0xff] %v3746_v38  ;;  %v612_v38 = vmul.f32 %v2638_v37, %v2981_v45  ;;  %v3793_v37 = vmul.f32 %v3667_v49, %v597_v57  ;;  %v664_v49 = vmul.f32 %v2979_v44, %v608_v47 }
 0x392   : >> { %v3748_v20 = vpop.permute.xlu1 %1562 }
 0x393   : >> { %4527 = vst [vmem:[#allocation71_spill] sm:$0xff] %v3748_v20  ;;  %v3750_v18 = vpop.permute.xlu0 %1564  ;;  %v600_v20 = vmul.f32 %v3574_v17, %v2981_v45  ;;  %v604_v17 = vmul.f32 %v3609_v19, %v2981_v45 }
 0x394   : >> { %4528 = vst [vmem:[#allocation72_spill] sm:$0xff] %v3750_v18  ;;  %v601_v18 = vmul.f32 %v3581_v40, %v597_v57  ;;  %v3782_v40 = vmul.f32 %v3659_v58, %v2981_v45 }
 0x395   : >> { %v656_v19 = vmul.f32 %v2972_v41, %v600_v20 }
 0x396   : >> { %v3752_v33 = vpop.permute.xlu1 %1566  ;;  %v657_v58 = vmul.f32 %v2972_v41, %v601_v18  ;;  %v668_v41 = vmul.f32 %v2985_v46, %v612_v38  ;;  %v4539_v38 = vld [vmem:[#allocation6_spill] sm:$0xff] }
 0x397   : >> { %4529 = vst [vmem:[#allocation73_spill] sm:$0xff] %v3752_v33  ;;  %v3754_v39 = vpop.permute.xlu0 %1568  ;;  %v602_v33 = vmul.f32 %v3593_v27, %v2981_v45  ;;  %v3785_v27 = vmul.f32 %v2640_v52, %v2981_v45  ;;  %v3800_v52 = vmul.f32 %v2641_v53, %v597_v57 }
 0x398   : >> { %4530 = vst [vmem:[#allocation74_spill] sm:$0xff] %v3754_v39  ;;  %v607_v39 = vmul.f32 %v3631_v1, %v597_v57  ;;  %v613_v1 = vmul.f32 %v3682_v34, %v597_v57 }
 0x39a   : >> { %v3756_v62 = vpop.permute.xlu1 %1570  ;;  %v663_v34 = vmul.f32 %v2976_v43, %v607_v39  ;;  %v809_v39 = vadd.f32 %v785_v30, %v656_v19  ;;  %v4541_v30 = vld [vmem:[#allocation15_spill] sm:$0xff] }
 0x39b   : >> { %4531 = vst [vmem:[#allocation75_spill] sm:$0xff] %v3756_v62  ;;  %v3758_v9 = vpop.permute.xlu0 %1572  ;;  %v606_v62 = vmul.f32 %v3625_v59, %v2981_v45  ;;  %v658_v45 = vmul.f32 %v2974_v42, %v602_v33  ;;  %v786_v33 = vsel %vm784_vm10, %v3146_v4, %v3148_v5  ;;  %v4538_v4 = vld [vmem:[#allocation10_spill] sm:$0xff] }
 0x39c   : >> { %4532 = vst [vmem:[#allocation76_spill] sm:$0xff] %v3758_v9  ;;  %v603_v9 = vmul.f32 %v3599_v14, %v597_v57  ;;  %v609_v14 = vmul.f32 %v3649_v21, %v597_v57  ;;  %v816_v15 = vadd.f32 %v3156_v22, %v663_v34  ;;  %v4550_v34 = vld [vmem:[#allocation13_spill] sm:$0xff] }
 0x39d   : >> { %v662_v21 = vmul.f32 %v2976_v43, %v606_v62  ;;  %v788_v43 = vsel %vm784_vm10, %v3154_v11, %v3156_v22  ;;  %v810_v62 = vadd.f32 %v3144_v3, %v657_v58  ;;  %v4540_v11 = vld [vmem:[#allocation5_spill] sm:$0xff]  ;;  %v4542_v3 = vld [vmem:[#allocation12_spill] sm:$0xff] }
 0x39e   : >> { %v3762_v28 = vpop.permute.xlu1 %1678  ;;  %v659_v35 = vmul.f32 %v2974_v42, %v603_v9  ;;  %v665_v20 = vmul.f32 %v2979_v44, %v609_v14  ;;  %v669_v42 = vmul.f32 %v2985_v46, %v613_v1  ;;  %v4537_v9 = vld [vmem:[#allocation9_spill] sm:$0xff]  ;;  %v811_v46 = vadd.f32 %v786_v33, %v658_v45  ;;  %v4545_v45 = vld [vmem:[#allocation8_spill] sm:$0xff] }
 0x39f   : >> { %v3764_v32 = vpop.permute.xlu0 %1680  ;;  %v791_v18 = vsel %vm784_vm10, %v4538_v4, %v4537_v9  ;;  %v787_v47 = vsel %vm784_vm10, %v4540_v11, %v4539_v38  ;;  %v815_v14 = vadd.f32 %v788_v43, %v662_v21  ;;  %v817_v1 = vadd.f32 %v789_v2, %v664_v49  ;;  %v4544_v4 = vld [vmem:[#allocation7_spill] sm:$0xff]  ;;  %v4546_v11 = vld [vmem:[#allocation17_spill] sm:$0xff]  ;;  %v4552_v2 = vld [vmem:[#allocation18_spill] sm:$0xff] }
 0x3a0   : >> { %v812_v57 = vadd.f32 %v3148_v5, %v659_v35  ;;  %v818_v19 = vadd.f32 %v3160_v16, %v665_v20  ;;  %v955_v58 = vsel %vm954_vm11, %v4542_v3, %v4541_v30  ;;  %v790_v5 = vsel %vm784_vm10, %v4545_v45, %v4544_v4  ;;  %v4549_v16 = vld [vmem:[#allocation11_spill] sm:$0xff]  ;;  %v4551_v43 = vld [vmem:[#allocation21_spill] sm:$0xff] }
 0x3a1   : >> { %v821_v35 = vadd.f32 %v791_v18, %v668_v41  ;;  %v822_v33 = vadd.f32 %v4537_v9, %v669_v42  ;;  %v3852_v49 = vsel %vm784_vm10, %v4550_v34, %v4549_v16  ;;  %v980_v20 = vadd.f32 %v4541_v30, %v810_v62  ;;  %v4553_v41 = vld [vmem:[#allocation23_spill] sm:$0xff]  ;;  %v4554_v18 = vld [vmem:[#allocation20_spill] sm:$0xff] }
 0x3a2   : >> { %v3787_v59 = vpop.permute.xlu1 %1682  ;;  %v958_v3 = vsel %vm954_vm11, %v4552_v2, %v4551_v43  ;;  %v959_v42 = vsel %vm954_vm11, %v4554_v18, %v4553_v41  ;;  %v979_v9 = vadd.f32 %v955_v58, %v809_v39  ;;  %v4555_v45 = vld [vmem:[#allocation27_spill] sm:$0xff]  ;;  %v661_v34 = vmul.f32 %v3479_v55, %v605_v51  ;;  %v4558_v62 = vld [vmem:[#allocation16_spill] sm:$0xff]  ;;  %v4561_v18 = vld [vmem:[#allocation29_spill] sm:$0xff] }
 0x3a3   : >> { %4533 = vst [vmem:[#allocation77_spill] sm:$0xff] %v3787_v59  ;;  %v3795_v12 = vpop.permute.xlu0 %1684  ;;  %v957_v30 = vsel %vm954_vm11, %v4558_v62, %v4557_v29  ;;  %v986_v2 = vadd.f32 %v4551_v43, %v816_v15  ;;  %v660_v59 = vmul.f32 %v3479_v55, %v604_v17  ;;  %v985_v39 = vadd.f32 %v958_v3, %v815_v14  ;;  %v4565_v55 = vld [vmem:[#allocation32_spill] sm:$0xff]  ;;  %v4566_v17 = vld [vmem:[#allocation31_spill] sm:$0xff] }
 0x3a4   : >> { %4534 = vst [vmem:[#allocation78_spill] sm:$0xff] %v3795_v12  ;;  %v987_v58 = vadd.f32 %v959_v42, %v817_v1  ;;  %v992_v15 = vadd.f32 %v4555_v45, %v822_v33  ;;  %v1117_v14 = vsel %vm1115_vm12, %v4566_v17, %v4565_v55  ;;  %v4567_v3 = vld [vmem:[#allocation28_spill] sm:$0xff]  ;;  %v4571_v42 = vld [vmem:[#allocation35_spill] sm:$0xff] }
 0x3a6   : >> { %v3814_v53 = vpop.permute.xlu1 %1686 }
 0x3a7   : >> { %4535 = vst [vmem:[#allocation79_spill] sm:$0xff] %v3814_v53  ;;  %v3823_v44 = vpop.permute.xlu0 %1688 }
 0x3a8   : >> { %4536 = vst [vmem:[#allocation80_spill] sm:$0xff] %v3823_v44  ;;  %v4547_v44 = vld [vmem:[#allocation14_spill] sm:$0xff] }
 0x3a9   : >> { %v956_v22 = vsel %vm954_vm11, %v4547_v44, %v4546_v11  ;;  %v982_v44 = vadd.f32 %v4546_v11, %v812_v57  ;;  %v988_v57 = vadd.f32 %v4553_v41, %v818_v19  ;;  %v4560_v11 = vld [vmem:[#allocation30_spill] sm:$0xff]  ;;  %v4570_v41 = vld [vmem:[#allocation36_spill] sm:$0xff] }
 0x3aa   : >> { %v3838_v53 = vpop.permute.xlu1 %1690  ;;  %v981_v7 = vadd.f32 %v956_v22, %v811_v46  ;;  %v4563_v46 = vld [vmem:[#allocation25_spill] sm:$0xff]  ;;  %v4564_v22 = vld [vmem:[#allocation22_spill] sm:$0xff] }
 0x3ab   : >> { %4543 = vst [vmem:[#allocation9_spill] sm:$0xff] %v3838_v53  ;;  %v3847_v21 = vpop.permute.xlu0 %1692  ;;  %v4556_v53 = vld [vmem:[#allocation24_spill] sm:$0xff]  ;;  %v960_v62 = vsel %vm954_vm11, %v4564_v22, %v4563_v46  ;;  %v4568_v19 = vld [vmem:[#allocation26_spill] sm:$0xff]  ;;  %v667_v22 = vmul.f32 %v3494_v61, %v3793_v37 }
 0x3ac   : >> { %4548 = vst [vmem:[#allocation10_spill] sm:$0xff] %v3847_v21  ;;  %v961_v21 = vsel %vm954_vm11, %v4556_v53, %v4555_v45  ;;  %v1116_v53 = vsel %vm1115_vm12, %v4561_v18, %v4560_v11  ;;  %v3889_v1 = vsel %vm954_vm11, %v4568_v19, %v4567_v3  ;;  %v1119_v18 = vsel %vm1115_vm12, %v4571_v42, %v4570_v41  ;;  %v4572_v19 = vld [vmem:[#allocation38_spill] sm:$0xff] }
 0x3ad   : >> { %v991_v43 = vadd.f32 %v961_v21, %v821_v35  ;;  %4569 = vst [vmem:[#allocation15_spill] sm:$0xff] %v3889_v1  ;;  %v1140_v33 = vadd.f32 %v1116_v53, %v979_v9  ;;  %v1141_v35 = vadd.f32 %v4560_v11, %v980_v20  ;;  %v1143_v21 = vadd.f32 %v4565_v55, %v982_v44  ;;  %v4573_v1 = vld [vmem:[#allocation37_spill] sm:$0xff]  ;;  %v4574_v37 = vld [vmem:[#allocation34_spill] sm:$0xff]  ;;  %v4578_v55 = vld [vmem:[#allocation40_spill] sm:$0xff] }
 0x3ae   : >> { %v3871_v12 = vpop.permute.xlu1 %1694  ;;  %v813_v45 = vadd.f32 %v787_v47, %v660_v59  ;;  %v1120_v3 = vsel %vm1115_vm12, %v4573_v1, %v4572_v19  ;;  %v666_v42 = vmul.f32 %v3494_v61, %v3782_v40  ;;  %v4575_v9 = vld [vmem:[#allocation33_spill] sm:$0xff]  ;;  %v3914_v59 = vadd.f32 %v4570_v41, %v986_v2  ;;  %v4576_v47 = vld [vmem:[#allocation42_spill] sm:$0xff] }
 0x3af   : >> { %4559 = vst [vmem:[#allocation6_spill] sm:$0xff] %v3871_v12  ;;  %v3877_v51 = vpop.permute.xlu0 %1696  ;;  %v814_v12 = vadd.f32 %v4539_v38, %v661_v34  ;;  %v1118_v20 = vsel %vm1115_vm12, %v4575_v9, %v4574_v37  ;;  %v3911_v34 = vadd.f32 %v1119_v18, %v985_v39  ;;  %v4577_v44 = vld [vmem:[#allocation41_spill] sm:$0xff]  ;;  %v820_v61 = vadd.f32 %v4544_v4, %v667_v22  ;;  %v4579_v39 = vld [vmem:[#allocation39_spill] sm:$0xff]  ;;  %v4580_v18 = vld [vmem:[#allocation44_spill] sm:$0xff] }
 0x3b0   : >> { %4562 = vst [vmem:[#allocation5_spill] sm:$0xff] %v3877_v51  ;;  %v1142_v51 = vadd.f32 %v1117_v14, %v981_v7  ;;  %v3917_v7 = vadd.f32 %v4572_v19, %v988_v57  ;;  %v1122_v11 = vsel %vm1115_vm12, %v4577_v44, %v4576_v47  ;;  %v3924_v53 = vadd.f32 %v1120_v3, %v987_v58  ;;  %v4581_v22 = vld [vmem:[#allocation43_spill] sm:$0xff] }
 0x3b1   : >> { %v984_v40 = vadd.f32 %v4557_v29, %v814_v12  ;;  %v1121_v14 = vsel %vm1115_vm12, %v4579_v39, %v4578_v55  ;;  %v1253_v2 = vsel %vm1252_vm13, %v3520_v24, %v3523_v48  ;;  %v983_v57 = vadd.f32 %v957_v30, %v813_v45 }
 0x3b2   : >> { %v3899_v17 = vpop.permute.xlu1 %1698  ;;  %v3935_v41 = vadd.f32 %v4576_v47, %v992_v15  ;;  %v819_v4 = vadd.f32 %v790_v5, %v666_v42  ;;  %v670_v29 = vmul.f32 %v3505_v8, %v3785_v27  ;;  %v671_v12 = vmul.f32 %v3505_v8, %v3800_v52 }
 0x3b3   : >> { %v3906_v38 = vpop.permute.xlu0 %1700  ;;  %v3943_v3 = vadd.f32 %v1122_v11, %v991_v43  ;;  %v3948_v24 = vsel %vm1115_vm12, %v4581_v22, %v4580_v18  ;;  %v1278_v30 = vadd.f32 %v3523_v48, %v1141_v35  ;;  %v1414_v5 = vsel %vm1413_vm14, %v3673_v31, %v3678_v13  ;;  %v4582_v11 = vld [vmem:[#allocation78_spill] sm:$0xff] }
 0x3b4   : >> { %v1277_v15 = vadd.f32 %v1253_v2, %v1140_v33  ;;  %v1145_v27 = vadd.f32 %v4574_v37, %v984_v40  ;;  %v990_v8 = vadd.f32 %v4563_v46, %v820_v61  ;;  %v1254_v52 = vsel %vm1252_vm13, %v3534_v54, %v3538_v26  ;;  %v4584_v2 = vld [vmem:[#allocation46_spill] sm:$0xff] }
 0x3b5   : >> { %v1144_v43 = vadd.f32 %v1118_v20, %v983_v57  ;;  %v1439_v45 = vadd.f32 %v3678_v13, %v1278_v30  ;;  %v1574_v48 = vsel %vm300_vm0, %v3728_v50, %v3730_v10  ;;  %v3966_v31 = vadd.f32 %v3852_v49, %v670_v29  ;;  %v4585_v57 = vld [vmem:[#allocation45_spill] sm:$0xff] }
 0x3b6   : >> { %v3932_v1 = vpop.permute.xlu1 %1702  ;;  %v824_v33 = vadd.f32 %v4549_v16, %v671_v12  ;;  %v989_v46 = vadd.f32 %v960_v62, %v819_v4  ;;  %v1438_v19 = vadd.f32 %v1414_v5, %v1277_v15  ;;  %v1280_v54 = vadd.f32 %v3538_v26, %v1143_v21  ;;  %v4587_v29 = vld [vmem:[#allocation65_spill] sm:$0xff]  ;;  %v4588_v15 = vld [vmem:[#allocation56_spill] sm:$0xff] }
 0x3b7   : >> { %v3941_v58 = vpop.permute.xlu0 %1704  ;;  %v1415_v13 = vsel %vm1413_vm14, %v3688_v25, %v3693_v36  ;;  %v1599_v37 = vadd.f32 %v3730_v10, %v1439_v45  ;;  %v1711_v50 = vsel %vm1710_vm15, %v3762_v28, %v3764_v32  ;;  %v1279_v49 = vadd.f32 %v1254_v52, %v1142_v51  ;;  %v4590_v45 = vld [vmem:[#allocation80_spill] sm:$0xff] }
 0x3b8   : >> { %v3980_v9 = vadd.f32 %v4578_v55, %v990_v8  ;;  %v1598_v16 = vadd.f32 %v1574_v48, %v1438_v19  ;;  %v1255_v26 = vsel %vm1252_vm13, %v3546_v56, %v3549_v0  ;;  %v1441_v62 = vadd.f32 %v3693_v36, %v1280_v54  ;;  %v4583_v36 = vld [vmem:[#allocation77_spill] sm:$0xff]  ;;  %v4591_v48 = vld [vmem:[#allocation79_spill] sm:$0xff] }
 0x3b9   : >> { %v1575_v25 = vsel %vm300_vm0, %v3732_v23, %v3734_v63  ;;  %v1736_v10 = vadd.f32 %v3764_v32, %v1599_v37  ;;  %v1282_v28 = vadd.f32 %v3549_v0, %v1145_v27  ;;  %v1440_v51 = vadd.f32 %v1415_v13, %v1279_v49  ;;  %v4589_v27 = vld [vmem:[#allocation55_spill] sm:$0xff]  ;;  %v4592_v13 = vld [vmem:[#allocation28_spill] sm:$0xff] }
 0x3ba   : >> { %v3963_v35 = vpop.permute.xlu1 %1706  ;;  %v1416_v20 = vsel %vm1413_vm14, %v3700_v60, %v3703_v6  ;;  %v1735_v47 = vadd.f32 %v1711_v50, %v1598_v16  ;;  %v1601_v56 = vadd.f32 %v3734_v63, %v1441_v62  ;;  %v1712_v61 = vsel %vm1710_vm15, %v4583_v36, %v4582_v11  ;;  %v4586_v63 = vld [vmem:[#allocation66_spill] sm:$0xff]  ;;  %v4593_v16 = vld [vmem:[#allocation48_spill] sm:$0xff] }
 0x3bb   : >> { %v3969_v42 = vpop.permute.xlu0 %1708  ;;  %v1281_v32 = vadd.f32 %v1255_v26, %v1144_v43  ;;  %v1150_v55 = vadd.f32 %v1121_v14, %v989_v46  ;;  %v1600_v0 = vadd.f32 %v1575_v25, %v1440_v51  ;;  %v1256_v60 = vsel %vm1252_vm13, %v4585_v57, %v4584_v2  ;;  %v4594_v26 = vld [vmem:[#allocation47_spill] sm:$0xff] }
 0x3bc   : >> { %v1443_v4 = vadd.f32 %v3703_v6, %v1282_v28  ;;  %v1576_v12 = vsel %vm300_vm0, %v4587_v29, %v4586_v63  ;;  %v1738_v22 = vadd.f32 %v4582_v11, %v1601_v56  ;;  %v1284_v14 = vadd.f32 %v4584_v2, %v3914_v59 }
 0x3bd   : >> { %v1442_v5 = vadd.f32 %v1416_v20, %v1281_v32  ;;  %v1417_v8 = vsel %vm1413_vm14, %v4589_v27, %v4588_v15  ;;  %v1737_v52 = vadd.f32 %v1712_v61, %v1600_v0  ;;  %v1713_v46 = vsel %vm1710_vm15, %v4591_v48, %v4590_v45  ;;  %v4600_v32 = vld [vmem:[#allocation9_spill] sm:$0xff] }
 0x3be   : >> { %v1840_v21 = vpop.permute.xlu1 %1839  ;;  %v1603_v43 = vadd.f32 %v4586_v63, %v1443_v4  ;;  %v1283_v59 = vadd.f32 %v1256_v60, %v3911_v34  ;;  %v994_v37 = vadd.f32 %v4592_v13, %v824_v33  ;;  %v1257_v62 = vsel %vm1252_vm13, %v4594_v26, %v4593_v16  ;;  %v4601_v60 = vld [vmem:[#allocation15_spill] sm:$0xff]  ;;  %v4609_v13 = vld [vmem:[#allocation6_spill] sm:$0xff] }
 0x3bf   : >> { %v1842_v44 = vpop.permute.xlu0 %1841  ;;  %v1602_v50 = vadd.f32 %v1576_v12, %v1442_v5  ;;  %v1445_v25 = vadd.f32 %v4588_v15, %v1284_v14  ;;  %v1286_v33 = vadd.f32 %v4593_v16, %v3917_v7  ;;  %v1285_v7 = vadd.f32 %v1257_v62, %v3924_v53  ;;  %v4602_v12 = vld [vmem:[#allocation50_spill] sm:$0xff]  ;;  %v4605_v15 = vld [vmem:[#allocation69_spill] sm:$0xff] }
 0x3c0   : >> { %v1872_v23 = vsel %vm1871_vm1, %v1840_v21, %v1842_v44  ;;  %v3999_v40 = vadd.f32 %v1842_v44, %v1736_v10  ;;  %v4595_v10 = vld [vmem:[#allocation68_spill] sm:$0xff]  ;;  %v4596_v21 = vld [vmem:[#allocation67_spill] sm:$0xff]  ;;  %v1740_v51 = vadd.f32 %v4590_v45, %v1603_v43  ;;  %v1444_v20 = vadd.f32 %v1417_v8, %v1283_v59  ;;  %v4598_v44 = vld [vmem:[#allocation57_spill] sm:$0xff] }
 0x3c1   : >> { %v4001_v39 = vadd.f32 %v1872_v23, %v1735_v47  ;;  %v1577_v28 = vsel %vm300_vm0, %v4596_v21, %v4595_v10  ;;  %v4597_v47 = vld [vmem:[#allocation58_spill] sm:$0xff]  ;;  %v1739_v11 = vadd.f32 %v1713_v46, %v1602_v50  ;;  %v1605_v61 = vadd.f32 %v4595_v10, %v1445_v25  ;;  %v4607_v43 = vld [vmem:[#allocation59_spill] sm:$0xff]  ;;  %v4608_v59 = vld [vmem:[#allocation5_spill] sm:$0xff] }
 0x3c2   : >> { %1930 = vrot.lane.b32.xlu0 %v3999_v40, %s2667_s8  ;;  %v1844_v30 = vpop.permute.xlu1 %1843  ;;  %v1418_v56 = vsel %vm1413_vm14, %v4598_v44, %v4597_v47  ;;  %v4599_v23 = vld [vmem:[#allocation10_spill] sm:$0xff]  ;;  %v993_v4 = vadd.f32 %v4601_v60, %v3966_v31  ;;  %v1604_v63 = vadd.f32 %v1577_v28, %v1444_v20  ;;  %v1447_v14 = vadd.f32 %v4597_v47, %v1286_v33  ;;  %v4610_v21 = vld [vmem:[#allocation52_spill] sm:$0xff]  ;;  %v4611_v28 = vld [vmem:[#allocation51_spill] sm:$0xff] }
 0x3c3   : >> { %v1846_v6 = vpop.permute.xlu0 %1845  ;;  %1928 = vrot.lane.b32.xlu1 %v4001_v39, %s2667_s8  ;;  %v1714_v0 = vsel %vm1710_vm15, %v4600_v32, %v4599_v23  ;;  %v4604_v5 = vld [vmem:[#allocation70_spill] sm:$0xff]  ;;  %v1742_v8 = vadd.f32 %v4599_v23, %v1605_v61  ;;  %v1288_v31 = vadd.f32 %v4602_v12, %v3980_v9  ;;  %v1715_v50 = vsel %vm1710_vm15, %v4609_v13, %v4608_v59  ;;  %v4612_v33 = vld [vmem:[#allocation72_spill] sm:$0xff]  ;;  %v4613_v20 = vld [vmem:[#allocation71_spill] sm:$0xff] }
 0x3c4   : >> { %v1873_v19 = vsel %vm1871_vm1, %v1844_v30, %v1846_v6  ;;  %v4025_v54 = vadd.f32 %v1846_v6, %v1738_v22  ;;  %v4603_v22 = vld [vmem:[#allocation49_spill] sm:$0xff]  ;;  %v1578_v27 = vsel %vm300_vm0, %v4605_v15, %v4604_v5  ;;  %v4606_v6 = vld [vmem:[#allocation60_spill] sm:$0xff]  ;;  %v1741_v48 = vadd.f32 %v1714_v0, %v1604_v63  ;;  %v4618_v15 = vld [vmem:[#allocation74_spill] sm:$0xff] }
 0x3c5   : >> { %v4029_v49 = vadd.f32 %v1873_v19, %v1737_v52  ;;  %v1258_v30 = vsel %vm1252_vm13, %v4603_v22, %v4602_v12  ;;  %v1446_v52 = vadd.f32 %v1418_v56, %v1285_v7  ;;  %v1419_v45 = vsel %vm1413_vm14, %v4607_v43, %v4606_v6  ;;  %v4614_v56 = vld [vmem:[#allocation62_spill] sm:$0xff] }
 0x3c6   : >> { %1934 = vrot.lane.b32.xlu0 %v4025_v54, %s2667_s8  ;;  %v1848_v34 = vpop.permute.xlu1 %1847  ;;  %v1607_v19 = vadd.f32 %v4604_v5, %v1447_v14  ;;  %v1287_v9 = vadd.f32 %v1258_v30, %v1150_v55  ;;  %v1155_v62 = vadd.f32 %v4580_v18, %v994_v37  ;;  %v1579_v47 = vsel %vm300_vm0, %v4613_v20, %v4612_v33  ;;  %v4616_v22 = vld [vmem:[#allocation54_spill] sm:$0xff]  ;;  %v4617_v30 = vld [vmem:[#allocation53_spill] sm:$0xff] }
 0x3c7   : >> { %v1850_v36 = vpop.permute.xlu0 %1849  ;;  %1932 = vrot.lane.b32.xlu1 %v4029_v49, %s2667_s8  ;;  %v1606_v25 = vadd.f32 %v1578_v27, %v1446_v52  ;;  %v1290_v18 = vadd.f32 %v4610_v21, %v3935_v41  ;;  %v1716_v0 = vsel %vm1710_vm15, %v3899_v17, %v3906_v38  ;;  %v1154_v60 = vadd.f32 %v3948_v24, %v993_v4  ;;  %v4619_v27 = vld [vmem:[#allocation73_spill] sm:$0xff] }
 0x3c8   : >> { %v1874_v2 = vsel %vm1871_vm1, %v1848_v34, %v1850_v36  ;;  %v4053_v57 = vadd.f32 %v1850_v36, %v1740_v51  ;;  %v1259_v51 = vsel %vm1252_vm13, %v4611_v28, %v4610_v21  ;;  %v1449_v34 = vadd.f32 %v4606_v6, %v1288_v31  ;;  %v4621_v31 = vld [vmem:[#allocation63_spill] sm:$0xff] }
 0x3c9   : >> { %v4058_v29 = vadd.f32 %v1874_v2, %v1739_v11  ;;  %v1744_v44 = vadd.f32 %v4608_v59, %v1607_v19  ;;  %v1448_v37 = vadd.f32 %v1419_v45, %v1287_v9  ;;  %v4615_v11 = vld [vmem:[#allocation61_spill] sm:$0xff]  ;;  %v1743_v61 = vadd.f32 %v1715_v50, %v1606_v25  ;;  %v4623_v9 = vld [vmem:[#allocation75_spill] sm:$0xff] }
 0x3ca   : >> { %1938 = vrot.lane.b32.xlu0 %v4053_v57, %s2667_s8  ;;  %v1852_v53 = vpop.permute.xlu1 %1851  ;;  %v1420_v36 = vsel %vm1413_vm14, %v4615_v11, %v4614_v56  ;;  %v1609_v32 = vadd.f32 %v4612_v33, %v1449_v34  ;;  %v1289_v41 = vadd.f32 %v1259_v51, %v3943_v3  ;;  %v1260_v14 = vsel %vm1252_vm13, %v4617_v30, %v4616_v22 }
 0x3cb   : >> { %v1854_v46 = vpop.permute.xlu0 %1853  ;;  %1936 = vrot.lane.b32.xlu1 %v4058_v29, %s2667_s8  ;;  %v1608_v63 = vadd.f32 %v1579_v47, %v1448_v37  ;;  %v1451_v5 = vadd.f32 %v4614_v56, %v1290_v18  ;;  %v1580_v17 = vsel %vm300_vm0, %v4619_v27, %v4618_v15  ;;  %v1292_v24 = vadd.f32 %v4616_v22, %v1155_v62 }
 0x3cc   : >> { %v1875_v16 = vsel %vm1871_vm1, %v1852_v53, %v1854_v46  ;;  %v4082_v26 = vadd.f32 %v1854_v46, %v1742_v8  ;;  %v1746_v8 = vadd.f32 %v3906_v38, %v1609_v32  ;;  %v1450_v4 = vadd.f32 %v1420_v36, %v1289_v41  ;;  %v4620_v53 = vld [vmem:[#allocation64_spill] sm:$0xff] }
 0x3cd   : >> { %v4085_v10 = vadd.f32 %v1875_v16, %v1741_v48  ;;  %v1421_v52 = vsel %vm1413_vm14, %v4621_v31, %v4620_v53  ;;  %v1745_v6 = vadd.f32 %v1716_v0, %v1608_v63  ;;  %v1611_v45 = vadd.f32 %v4618_v15, %v1451_v5  ;;  %v4622_v16 = vld [vmem:[#allocation76_spill] sm:$0xff] }
 0x3ce   : >> { %1942 = vrot.lane.b32.xlu0 %v4082_v26, %s2667_s8  ;;  %v1856_v55 = vpop.permute.xlu1 %1855  ;;  %v1717_v38 = vsel %vm1710_vm15, %v3932_v1, %v3941_v58  ;;  %v1291_v19 = vadd.f32 %v1260_v14, %v1154_v60  ;;  %v1610_v59 = vadd.f32 %v1580_v17, %v1450_v4  ;;  %v1453_v50 = vadd.f32 %v4620_v53, %v1292_v24 }
 0x3cf   : >> { %v1858_v23 = vpop.permute.xlu0 %1857  ;;  %1940 = vrot.lane.b32.xlu1 %v4085_v10, %s2667_s8  ;;  %v1581_v62 = vsel %vm300_vm0, %v4623_v9, %v4622_v16  ;;  %v1748_v25 = vadd.f32 %v3941_v58, %v1611_v45  ;;  %v1718_v33 = vsel %vm1710_vm15, %v3963_v35, %v3969_v42 }
 0x3d0   : >> { %v1876_v2 = vsel %vm1871_vm1, %v1856_v55, %v1858_v23  ;;  %v4109_v7 = vadd.f32 %v1858_v23, %v1744_v44  ;;  %v1452_v21 = vadd.f32 %v1421_v52, %v1291_v19  ;;  %v1747_v28 = vadd.f32 %v1717_v38, %v1610_v59 }
 0x3d1   : >> { %v4113_v12 = vadd.f32 %v1876_v2, %v1743_v61  ;;  %v1613_v34 = vadd.f32 %v4622_v16, %v1453_v50 }
 0x3d2   : >> { %1946 = vrot.lane.b32.xlu0 %v4109_v7, %s2667_s8  ;;  %v1860_v3 = vpop.permute.xlu1 %1859  ;;  %v1612_v58 = vadd.f32 %v1581_v62, %v1452_v21 }
 0x3d3   : >> { %v1862_v43 = vpop.permute.xlu0 %1861  ;;  %1944 = vrot.lane.b32.xlu1 %v4113_v12, %s2667_s8  ;;  %v1750_v55 = vadd.f32 %v3969_v42, %v1613_v34 }
 0x3d4   : >> { %v1877_v48 = vsel %vm1871_vm1, %v1860_v3, %v1862_v43  ;;  %v4136_v46 = vadd.f32 %v1862_v43, %v1746_v8  ;;  %v1749_v37 = vadd.f32 %v1718_v33, %v1612_v58 }
 0x3d5   : >> { %v4138_v13 = vadd.f32 %v1877_v48, %v1745_v6 }
 0x3d6   : >> { %1950 = vrot.lane.b32.xlu0 %v4136_v46, %s2667_s8  ;;  %v1864_v1 = vpop.permute.xlu1 %1863 }
 0x3d7   : >> { %v1866_v51 = vpop.permute.xlu0 %1865  ;;  %1948 = vrot.lane.b32.xlu1 %v4138_v13, %s2667_s8 }
 0x3d8   : >> { %v1878_v20 = vsel %vm1871_vm1, %v1864_v1, %v1866_v51  ;;  %v4154_v47 = vadd.f32 %v1866_v51, %v1748_v25 }
 0x3d9   : >> { %v4156_v44 = vadd.f32 %v1878_v20, %v1747_v28 }
 0x3da   : >> { %1954 = vrot.lane.b32.xlu0 %v4154_v47, %s2667_s8  ;;  %v1868_v18 = vpop.permute.xlu1 %1867 }
 0x3db   : >> { %v1870_v56 = vpop.permute.xlu0 %1869  ;;  %1952 = vrot.lane.b32.xlu1 %v4156_v44, %s2667_s8 }
 0x3dc   : >> { %v1879_v35 = vsel %vm1871_vm1, %v1868_v18, %v1870_v56  ;;  %v4164_v11 = vadd.f32 %v1870_v56, %v1750_v55 }
 0x3dd   : >> { %v4166_v36 = vadd.f32 %v1879_v35, %v1749_v37 }
 0x3de   : >> { %1958 = vrot.lane.b32.xlu0 %v4164_v11, %s2667_s8 }
 0x3df   : >> { %1956 = vrot.lane.b32.xlu1 %v4166_v36, %s2667_s8 }
 0x434   : >> { %v1931_v42 = vpop.permute.xlu0 %1930 }
 0x435   : >> { %v1985_v61 = vsel %vm1984_vm2, %v1931_v42, 0.0  ;;  %v1929_v23 = vpop.permute.xlu1 %1928 }
 0x436   : >> { %v1960_v32 = vsel %vm784_vm10, %v1929_v23, %v1931_v42 }
 0x437   : >> { %v1986_v0 = vadd.f32 %v1985_v61, %v1960_v32 }
 0x438   : >> { %v1935_v2 = vpop.permute.xlu0 %1934 }
 0x439   : >> { %v1989_v41 = vsel %vm1984_vm2, %v1935_v2, 0.0  ;;  %1987 = vadd.xlane.f32.xlu1 %v1986_v0  ;;  %v1933_v60 = vpop.permute.xlu1 %1932 }
 0x43a   : >> { %v1961_v63 = vsel %vm784_vm10, %v1933_v60, %v1935_v2 }
 0x43b   : >> { %v1990_v22 = vadd.f32 %v1989_v41, %v1961_v63 }
 0x43c   : >> { %v1939_v30 = vpop.permute.xlu0 %1938 }
 0x43d   : >> { %v1993_v14 = vsel %vm1984_vm2, %v1939_v30, 0.0  ;;  %1991 = vadd.xlane.f32.xlu0 %v1990_v22  ;;  %v1937_v5 = vpop.permute.xlu1 %1936 }
 0x43e   : >> { %v1962_v15 = vsel %vm784_vm10, %v1937_v5, %v1939_v30 }
 0x43f   : >> { %v1994_v27 = vadd.f32 %v1993_v14, %v1962_v15 }
 0x440   : >> { %v1943_v17 = vpop.permute.xlu0 %1942 }
 0x441   : >> { %v1997_v8 = vsel %vm1984_vm2, %v1943_v17, 0.0  ;;  %1995 = vadd.xlane.f32.xlu0 %v1994_v27  ;;  %v1941_v3 = vpop.permute.xlu1 %1940 }
 0x442   : >> { %v1963_v24 = vsel %vm784_vm10, %v1941_v3, %v1943_v17 }
 0x443   : >> { %v1998_v4 = vadd.f32 %v1997_v8, %v1963_v24 }
 0x444   : >> { %v1947_v53 = vpop.permute.xlu0 %1946 }
 0x445   : >> { %v2001_v31 = vsel %vm1984_vm2, %v1947_v53, 0.0  ;;  %1999 = vadd.xlane.f32.xlu1 %v1998_v4  ;;  %v1945_v52 = vpop.permute.xlu1 %1944 }
 0x446   : >> { %v1964_v6 = vsel %vm784_vm10, %v1945_v52, %v1947_v53 }
 0x447   : >> { %v2002_v43 = vadd.f32 %v2001_v31, %v1964_v6 }
 0x448   : >> { %v1951_v45 = vpop.permute.xlu0 %1950 }
 0x449   : >> { %v2005_v38 = vsel %vm1984_vm2, %v1951_v45, 0.0  ;;  %2003 = vadd.xlane.f32.xlu0 %v2002_v43  ;;  %v1949_v48 = vpop.permute.xlu1 %1948 }
 0x44a   : >> { %v1965_v19 = vsel %vm784_vm10, %v1949_v48, %v1951_v45 }
 0x44b   : >> { %v2006_v59 = vadd.f32 %v2005_v38, %v1965_v19 }
 0x44c   : >> { %v1955_v50 = vpop.permute.xlu0 %1954 }
 0x44d   : >> { %v2009_v16 = vsel %vm1984_vm2, %v1955_v50, 0.0  ;;  %2007 = vadd.xlane.f32.xlu1 %v2006_v59  ;;  %v1953_v9 = vpop.permute.xlu1 %1952 }
 0x44e   : >> { %v1966_v62 = vsel %vm784_vm10, %v1953_v9, %v1955_v50 }
 0x44f   : >> { %v2010_v25 = vadd.f32 %v2009_v16, %v1966_v62 }
 0x450   : >> { %v1959_v1 = vpop.permute.xlu0 %1958 }
 0x451   : >> { %v2013_v21 = vsel %vm1984_vm2, %v1959_v1, 0.0  ;;  %2011 = vadd.xlane.f32.xlu0 %v2010_v25  ;;  %v1957_v28 = vpop.permute.xlu1 %1956 }
 0x452   : >> { %v1967_v51 = vsel %vm784_vm10, %v1957_v28, %v1959_v1 }
 0x453   : >> { %v2014_v34 = vadd.f32 %v2013_v21, %v1967_v51 }
 0x455   : >> { %2015 = vadd.xlane.f32.xlu1 %v2014_v34 }
 0x4c6   : >> { %v1988_v33 = vpop.xlane.xlu1 %1987 }
 0x4c7   : >> { %v2017_v20 = vmul.f32 0.0051020407, %v1988_v33 }
 0x4c9   : >> { %v4189_v58 = vsub.f32 %v4001_v39, %v2017_v20  ;;  %v4192_v55 = vsub.f32 %v3999_v40, %v2017_v20 }
 0x4ca   : >> { %v1992_v18 = vpop.xlane.xlu0 %1991 }
 0x4cb   : >> { %v2041_v37 = vmul.f32 %v4189_v58, %v4189_v58  ;;  %v2042_v56 = vmul.f32 %v4192_v55, %v4192_v55  ;;  %v2018_v35 = vmul.f32 0.0051020407, %v1992_v18 }
 0x4cd   : >> { %v4199_v42 = vsub.f32 %v4029_v49, %v2018_v35  ;;  %v4202_v61 = vsub.f32 %v4025_v54, %v2018_v35  ;;  %2075 = vrot.lane.b32.xlu1 %v2042_v56, %s2667_s8  ;;  %2073 = vrot.lane.b32.xlu0 %v2041_v37, %s2667_s8 }
 0x4ce   : >> { %v1996_v40 = vpop.xlane.xlu0 %1995 }
 0x4cf   : >> { %v2043_v39 = vmul.f32 %v4199_v42, %v4199_v42  ;;  %v2044_v23 = vmul.f32 %v4202_v61, %v4202_v61  ;;  %v2019_v32 = vmul.f32 0.0051020407, %v1996_v40 }
 0x4d1   : >> { %v4211_v0 = vsub.f32 %v4058_v29, %v2019_v32  ;;  %v4214_v49 = vsub.f32 %v4053_v57, %v2019_v32  ;;  %2077 = vrot.lane.b32.xlu1 %v2043_v39, %s2667_s8  ;;  %2079 = vrot.lane.b32.xlu0 %v2044_v23, %s2667_s8 }
 0x4d2   : >> { %v2000_v54 = vpop.xlane.xlu1 %1999 }
 0x4d3   : >> { %v2045_v2 = vmul.f32 %v4211_v0, %v4211_v0  ;;  %v2046_v41 = vmul.f32 %v4214_v49, %v4214_v49  ;;  %v2020_v60 = vmul.f32 0.0051020407, %v2000_v54 }
 0x4d5   : >> { %v4223_v63 = vsub.f32 %v4085_v10, %v2020_v60  ;;  %v4226_v29 = vsub.f32 %v4082_v26, %v2020_v60  ;;  %2081 = vrot.lane.b32.xlu1 %v2045_v2, %s2667_s8  ;;  %2083 = vrot.lane.b32.xlu0 %v2046_v41, %s2667_s8 }
 0x4d6   : >> { %v2004_v57 = vpop.xlane.xlu0 %2003 }
 0x4d7   : >> { %v2047_v22 = vmul.f32 %v4223_v63, %v4223_v63  ;;  %v2048_v30 = vmul.f32 %v4226_v29, %v4226_v29  ;;  %v2021_v14 = vmul.f32 0.0051020407, %v2004_v57 }
 0x4d9   : >> { %v4235_v5 = vsub.f32 %v4113_v12, %v2021_v14  ;;  %v4238_v10 = vsub.f32 %v4109_v7, %v2021_v14  ;;  %2087 = vrot.lane.b32.xlu0 %v2048_v30, %s2667_s8  ;;  %2085 = vrot.lane.b32.xlu1 %v2047_v22, %s2667_s8 }
 0x4da   : >> { %v2008_v26 = vpop.xlane.xlu1 %2007 }
 0x4db   : >> { %v2049_v15 = vmul.f32 %v4235_v5, %v4235_v5  ;;  %v2050_v27 = vmul.f32 %v4238_v10, %v4238_v10  ;;  %v2022_v17 = vmul.f32 0.0051020407, %v2008_v26 }
 0x4dd   : >> { %v4247_v8 = vsub.f32 %v4138_v13, %v2022_v17  ;;  %v4250_v12 = vsub.f32 %v4136_v46, %v2022_v17  ;;  %2091 = vrot.lane.b32.xlu0 %v2050_v27, %s2667_s8  ;;  %2089 = vrot.lane.b32.xlu1 %v2049_v15, %s2667_s8 }
 0x4de   : >> { %v2012_v7 = vpop.xlane.xlu0 %2011 }
 0x4df   : >> { %v2051_v3 = vmul.f32 %v4247_v8, %v4247_v8  ;;  %v2052_v24 = vmul.f32 %v4250_v12, %v4250_v12  ;;  %v2023_v4 = vmul.f32 0.0051020407, %v2012_v7 }
 0x4e1   : >> { %v4259_v53 = vsub.f32 %v4156_v44, %v2023_v4  ;;  %v4262_v13 = vsub.f32 %v4154_v47, %v2023_v4  ;;  %2095 = vrot.lane.b32.xlu0 %v2052_v24, %s2667_s8  ;;  %2093 = vrot.lane.b32.xlu1 %v2051_v3, %s2667_s8  ;;  %v2259_v24 = vld [vmem:[%s4306_s27] sm:$0xff]  ;;  %v2260_v4 = vld [vmem:[%s4306_s27 + $0x8] sm:$0xff] }
 0x4e2   : >> { %v2016_v46 = vpop.xlane.xlu1 %2015 }
 0x4e3   : >> { %v2053_v31 = vmul.f32 %v4259_v53, %v4259_v53  ;;  %v2054_v52 = vmul.f32 %v4262_v13, %v4262_v13  ;;  %v2024_v6 = vmul.f32 0.0051020407, %v2016_v46  ;;  %v2261_v46 = vld [vmem:[%s4306_s27 + $0x10] sm:$0xff] }
 0x4e5   : >> { %v4271_v43 = vsub.f32 %v4166_v36, %v2024_v6  ;;  %v4274_v44 = vsub.f32 %v4164_v11, %v2024_v6  ;;  %2099 = vrot.lane.b32.xlu0 %v2054_v52, %s2667_s8  ;;  %2097 = vrot.lane.b32.xlu1 %v2053_v31, %s2667_s8  ;;  %v2262_v31 = vld [vmem:[%s4306_s27 + $0x18] sm:$0xff]  ;;  %v2263_v52 = vld [vmem:[%s4306_s27 + $0x20] sm:$0xff] }
 0x4e6   : >> { %v2264_v6 = vld [vmem:[%s4306_s27 + $0x28] sm:$0xff] }
 0x4e7   : >> { %v2055_v47 = vmul.f32 %v4271_v43, %v4271_v43  ;;  %v2056_v45 = vmul.f32 %v4274_v44, %v4274_v44 }
 0x4e9   : >> { %2103 = vrot.lane.b32.xlu0 %v2056_v45, %s2667_s8  ;;  %2101 = vrot.lane.b32.xlu1 %v2055_v47, %s2667_s8 }
 0x53f   : >> { %v2074_v38 = vpop.permute.xlu0 %2073  ;;  %v2076_v36 = vpop.permute.xlu1 %2075 }
 0x540   : >> { %v2105_v48 = vsel %vm784_vm10, %v2074_v38, %v2076_v36  ;;  %v2129_v11 = vsel %vm1984_vm2, %v2076_v36, 0.0 }
 0x541   : >> { %v2130_v19 = vadd.f32 %v2129_v11, %v2105_v48 }
 0x543   : >> { %v2080_v59 = vpop.permute.xlu0 %2079  ;;  %2131 = vadd.xlane.f32.xlu1 %v2130_v19  ;;  %v2078_v50 = vpop.permute.xlu1 %2077 }
 0x544   : >> { %v2133_v16 = vsel %vm1984_vm2, %v2080_v59, 0.0  ;;  %v2106_v9 = vsel %vm784_vm10, %v2078_v50, %v2080_v59 }
 0x545   : >> { %v2134_v62 = vadd.f32 %v2133_v16, %v2106_v9 }
 0x547   : >> { %v2084_v25 = vpop.permute.xlu0 %2083  ;;  %2135 = vadd.xlane.f32.xlu0 %v2134_v62  ;;  %v2082_v1 = vpop.permute.xlu1 %2081  ;;  %v2186_v62 = vld [vmem:[%s4320_s10] sm:$0xff] }
 0x548   : >> { %v2137_v21 = vsel %vm1984_vm2, %v2084_v25, 0.0  ;;  %v2107_v28 = vsel %vm784_vm10, %v2082_v1, %v2084_v25 }
 0x549   : >> { %v2138_v51 = vadd.f32 %v2137_v21, %v2107_v28 }
 0x54b   : >> { %v2088_v34 = vpop.permute.xlu0 %2087  ;;  %2139 = vadd.xlane.f32.xlu0 %v2138_v51  ;;  %v2086_v33 = vpop.permute.xlu1 %2085 }
 0x54c   : >> { %v2141_v20 = vsel %vm1984_vm2, %v2088_v34, 0.0  ;;  %v2108_v18 = vsel %vm784_vm10, %v2086_v33, %v2088_v34  ;;  %v2187_v34 = vld [vmem:[%s4320_s10 + $0x8] sm:$0xff] }
 0x54d   : >> { %v2142_v37 = vadd.f32 %v2141_v20, %v2108_v18  ;;  %v2266_v18 = vld [vmem:[%s4306_s27 + $0x38] sm:$0xff] }
 0x54f   : >> { %v2092_v56 = vpop.permute.xlu0 %2091  ;;  %2143 = vadd.xlane.f32.xlu1 %v2142_v37  ;;  %v2090_v35 = vpop.permute.xlu1 %2089 }
 0x550   : >> { %v2145_v40 = vsel %vm1984_vm2, %v2092_v56, 0.0  ;;  %v2109_v39 = vsel %vm784_vm10, %v2090_v35, %v2092_v56 }
 0x551   : >> { %v2146_v23 = vadd.f32 %v2145_v40, %v2109_v39  ;;  %v2188_v40 = vld [vmem:[%s4320_s10 + $0x10] sm:$0xff] }
 0x553   : >> { %v2096_v32 = vpop.permute.xlu0 %2095  ;;  %2147 = vadd.xlane.f32.xlu0 %v2146_v23  ;;  %v2094_v54 = vpop.permute.xlu1 %2093 }
 0x554   : >> { %v2149_v2 = vsel %vm1984_vm2, %v2096_v32, 0.0  ;;  %v2110_v41 = vsel %vm784_vm10, %v2094_v54, %v2096_v32 }
 0x555   : >> { %v2150_v60 = vadd.f32 %v2149_v2, %v2110_v41  ;;  %v2189_v41 = vld [vmem:[%s4320_s10 + $0x18] sm:$0xff] }
 0x557   : >> { %v2100_v57 = vpop.permute.xlu0 %2099  ;;  %2151 = vadd.xlane.f32.xlu1 %v2150_v60  ;;  %v2098_v22 = vpop.permute.xlu1 %2097 }
 0x558   : >> { %v2153_v30 = vsel %vm1984_vm2, %v2100_v57, 0.0  ;;  %v2111_v14 = vsel %vm784_vm10, %v2098_v22, %v2100_v57 }
 0x559   : >> { %v2154_v26 = vadd.f32 %v2153_v30, %v2111_v14 }
 0x55b   : >> { %v2104_v15 = vpop.permute.xlu0 %2103  ;;  %2155 = vadd.xlane.f32.xlu0 %v2154_v26  ;;  %v2102_v27 = vpop.permute.xlu1 %2101  ;;  %v2190_v26 = vld [vmem:[%s4320_s10 + $0x20] sm:$0xff] }
 0x55c   : >> { %v2157_v17 = vsel %vm1984_vm2, %v2104_v15, 0.0  ;;  %v2112_v7 = vsel %vm784_vm10, %v2102_v27, %v2104_v15 }
 0x55d   : >> { %v2158_v3 = vadd.f32 %v2157_v17, %v2112_v7  ;;  %v2191_v7 = vld [vmem:[%s4320_s10 + $0x28] sm:$0xff] }
 0x55f   : >> { %2159 = vadd.xlane.f32.xlu1 %v2158_v3 }
 0x570   : >> { %2269 = vperm.xlu1 %2609, %v2259_v24  }
 0x571   : >> { %2274 = vperm.xlu0 %2608, %v2260_v4   ;;  %v2192_v4 = vld [vmem:[%s4320_s10 + $0x30] sm:$0xff] }
 0x574   : >> { %2279 = vperm.xlu1 %2609, %v2261_v46  }
 0x575   : >> { %2284 = vperm.xlu0 %2608, %v2262_v31  }
 0x578   : >> { %2289 = vperm.xlu1 %2609, %v2263_v52   ;;  %v2193_v52 = vld [vmem:[%s4320_s10 + $0x38] sm:$0xff] }
 0x579   : >> { %2294 = vperm.xlu0 %2608, %v2264_v6  }
 0x5d0   : >> { %v2132_v47 = vpop.xlane.xlu1 %2131 }
 0x5d1   : >> { %v2161_v45 = vmul.f32 0.0051020407, %v2132_v47 }
 0x5d3   : >> { %v2169_v38 = vadd.f32 0.001, %v2161_v45  ;;  %v2265_v45 = vld [vmem:[%s4306_s27 + $0x30] sm:$0xff] }
 0x5d4   : >> { %v2136_v36 = vpop.xlane.xlu0 %2135 }
 0x5d5   : >> { %2610 = vrsqrt.f32 %v2169_v38  ;;  %v2162_v48 = vmul.f32 0.0051020407, %v2136_v36 }
 0x5d7   : >> { %v2170_v11 = vadd.f32 0.001, %v2162_v48 }
 0x5d8   : >> { %v2140_v19 = vpop.xlane.xlu0 %2139 }
 0x5d9   : >> { %2612 = vrsqrt.f32 %v2170_v11  ;;  %v2163_v59 = vmul.f32 0.0051020407, %v2140_v19 }
 0x5db   : >> { %v2171_v50 = vadd.f32 0.001, %v2163_v59 }
 0x5dc   : >> { %v2144_v16 = vpop.xlane.xlu1 %2143 }
 0x5dd   : >> { %2614 = vrsqrt.f32 %v2171_v50  ;;  %v2164_v9 = vmul.f32 0.0051020407, %v2144_v16 }
 0x5df   : >> { %v2611_v25 = vpop.eup %2610  ;;  %v2172_v1 = vadd.f32 0.001, %v2164_v9 }
 0x5e0   : >> { %v2148_v21 = vpop.xlane.xlu0 %2147  ;;  %v2194_v28 = vmul.f32 %v2611_v25, %v2186_v62 }
 0x5e1   : >> { %2616 = vrsqrt.f32 %v2172_v1  ;;  %v2165_v51 = vmul.f32 0.0051020407, %v2148_v21 }
 0x5e2   : >> { %2204 = vperm.xlu0 %2608, %v2194_v28  }
 0x5e3   : >> { %v2613_v33 = vpop.eup %2612  ;;  %v2173_v20 = vadd.f32 0.001, %v2165_v51 }
 0x5e4   : >> { %v2152_v37 = vpop.xlane.xlu1 %2151  ;;  %v2195_v56 = vmul.f32 %v2613_v33, %v2187_v34 }
 0x5e5   : >> { %2618 = vrsqrt.f32 %v2173_v20  ;;  %v2166_v35 = vmul.f32 0.0051020407, %v2152_v37 }
 0x5e6   : >> { %2209 = vperm.xlu1 %2609, %v2195_v56   ;;  %2304 = vperm.xlu0 %2608, %v2266_v18  }
 0x5e7   : >> { %v2615_v39 = vpop.eup %2614  ;;  %v2174_v23 = vadd.f32 0.001, %v2166_v35 }
 0x5e8   : >> { %v2156_v32 = vpop.xlane.xlu0 %2155  ;;  %v2196_v54 = vmul.f32 %v2615_v39, %v2188_v40 }
 0x5e9   : >> { %2620 = vrsqrt.f32 %v2174_v23  ;;  %v2167_v2 = vmul.f32 0.0051020407, %v2156_v32 }
 0x5ea   : >> { %2214 = vperm.xlu1 %2609, %v2196_v54  }
 0x5eb   : >> { %v2617_v60 = vpop.eup %2616  ;;  %v2175_v57 = vadd.f32 0.001, %v2167_v2 }
 0x5ec   : >> { %v2160_v22 = vpop.xlane.xlu1 %2159  ;;  %v2197_v30 = vmul.f32 %v2617_v60, %v2189_v41 }
 0x5ed   : >> { %2622 = vrsqrt.f32 %v2175_v57  ;;  %v2168_v14 = vmul.f32 0.0051020407, %v2160_v22 }
 0x5ee   : >> { %2219 = vperm.xlu1 %2609, %v2197_v30  }
 0x5ef   : >> { %v2619_v15 = vpop.eup %2618  ;;  %v2176_v27 = vadd.f32 0.001, %v2168_v14 }
 0x5f0   : >> { %v2198_v17 = vmul.f32 %v2619_v15, %v2190_v26  ;;  %v2275_v38 = vpop.permute.xlu0 %2274  ;;  %v2270_v36 = vpop.permute.xlu1 %2269 }
 0x5f1   : >> { %2624 = vrsqrt.f32 %v2176_v27 }
 0x5f2   : >> { %2224 = vperm.xlu1 %2609, %v2198_v17  }
 0x5f3   : >> { %v2621_v3 = vpop.eup %2620 }
 0x5f4   : >> { %v2199_v24 = vmul.f32 %v2621_v3, %v2191_v7  ;;  %v2285_v48 = vpop.permute.xlu0 %2284  ;;  %v2280_v11 = vpop.permute.xlu1 %2279 }
 0x5f6   : >> { %2229 = vperm.xlu1 %2609, %v2199_v24  }
 0x5f7   : >> { %v2623_v46 = vpop.eup %2622 }
 0x5f8   : >> { %v2200_v31 = vmul.f32 %v2623_v46, %v2192_v4  ;;  %v2295_v19 = vpop.permute.xlu0 %2294  ;;  %v2290_v59 = vpop.permute.xlu1 %2289 }
 0x5fa   : >> { %2234 = vperm.xlu1 %2609, %v2200_v31  }
 0x5fb   : >> { %v2625_v6 = vpop.eup %2624 }
 0x5fc   : >> { %v2201_v47 = vmul.f32 %v2625_v6, %v2193_v52 }
 0x5fe   : >> { %2239 = vperm.xlu1 %2609, %v2201_v47  }
 0x602   : >> { %2299 = vperm.xlu1 %2609, %v2265_v45  }
 0x661   : >> { %v2205_v50 = vpop.permute.xlu0 %2204 }
 0x662   : >> { %v2242_v16 = vmul.f32 %v2205_v50, %v4189_v58  ;;  %v2243_v9 = vmul.f32 %v2205_v50, %v4192_v55 }
 0x664   : >> { %v2307_v62 = vadd.f32 %v2270_v36, %v2242_v16  ;;  %v2308_v25 = vadd.f32 %v2270_v36, %v2243_v9 }
 0x665   : >> { %v2210_v1 = vpop.permute.xlu1 %2209  ;;  %v2305_v14 = vpop.permute.xlu0 %2304 }
 0x666   : >> { %v2244_v21 = vmul.f32 %v2210_v1, %v4199_v42  ;;  %v2245_v28 = vmul.f32 %v2210_v1, %v4202_v61  ;;  %2341 = vrot.lane.b32.xlu0 %v2308_v25, %s2667_s8  ;;  %2339 = vrot.lane.b32.xlu1 %v2307_v62, %s2667_s8 }
 0x668   : >> { %v2309_v51 = vadd.f32 %v2275_v38, %v2244_v21  ;;  %v2310_v34 = vadd.f32 %v2275_v38, %v2245_v28 }
 0x669   : >> { %v2215_v33 = vpop.permute.xlu1 %2214 }
 0x66a   : >> { %v2246_v20 = vmul.f32 %v2215_v33, %v4211_v0  ;;  %v2247_v58 = vmul.f32 %v2215_v33, %v4214_v49  ;;  %2345 = vrot.lane.b32.xlu0 %v2310_v34, %s2667_s8  ;;  %2343 = vrot.lane.b32.xlu1 %v2309_v51, %s2667_s8 }
 0x66c   : >> { %v2311_v55 = vadd.f32 %v2280_v11, %v2246_v20  ;;  %v2312_v18 = vadd.f32 %v2280_v11, %v2247_v58 }
 0x66d   : >> { %v2220_v42 = vpop.permute.xlu1 %2219 }
 0x66e   : >> { %v2248_v61 = vmul.f32 %v2220_v42, %v4223_v63  ;;  %v2249_v37 = vmul.f32 %v2220_v42, %v4226_v29  ;;  %2349 = vrot.lane.b32.xlu0 %v2312_v18, %s2667_s8  ;;  %2347 = vrot.lane.b32.xlu1 %v2311_v55, %s2667_s8 }
 0x670   : >> { %v2313_v56 = vadd.f32 %v2285_v48, %v2248_v61  ;;  %v2314_v35 = vadd.f32 %v2285_v48, %v2249_v37 }
 0x671   : >> { %v2225_v0 = vpop.permute.xlu1 %2224 }
 0x672   : >> { %v2250_v49 = vmul.f32 %v2225_v0, %v4235_v5  ;;  %v2251_v40 = vmul.f32 %v2225_v0, %v4238_v10  ;;  %2353 = vrot.lane.b32.xlu0 %v2314_v35, %s2667_s8  ;;  %2351 = vrot.lane.b32.xlu1 %v2313_v56, %s2667_s8 }
 0x674   : >> { %v2315_v39 = vadd.f32 %v2290_v59, %v2250_v49  ;;  %v2316_v23 = vadd.f32 %v2290_v59, %v2251_v40 }
 0x675   : >> { %v2230_v63 = vpop.permute.xlu1 %2229 }
 0x676   : >> { %v2252_v29 = vmul.f32 %v2230_v63, %v4247_v8  ;;  %v2253_v32 = vmul.f32 %v2230_v63, %v4250_v12  ;;  %2357 = vrot.lane.b32.xlu0 %v2316_v23, %s2667_s8  ;;  %2355 = vrot.lane.b32.xlu1 %v2315_v39, %s2667_s8 }
 0x678   : >> { %v2317_v54 = vadd.f32 %v2295_v19, %v2252_v29  ;;  %v2318_v2 = vadd.f32 %v2295_v19, %v2253_v32 }
 0x679   : >> { %v2235_v5 = vpop.permute.xlu1 %2234 }
 0x67a   : >> { %2361 = vrot.lane.b32.xlu0 %v2318_v2, %s2667_s8  ;;  %2359 = vrot.lane.b32.xlu1 %v2317_v54, %s2667_s8  ;;  %v2254_v41 = vmul.f32 %v2235_v5, %v4259_v53  ;;  %v2255_v8 = vmul.f32 %v2235_v5, %v4262_v13 }
 0x67d   : >> { %v2240_v10 = vpop.permute.xlu1 %2239 }
 0x67e   : >> { %v2256_v12 = vmul.f32 %v2240_v10, %v4271_v43  ;;  %v2257_v57 = vmul.f32 %v2240_v10, %v4274_v44 }
 0x680   : >> { %v2321_v26 = vadd.f32 %v2305_v14, %v2256_v12  ;;  %v2322_v15 = vadd.f32 %v2305_v14, %v2257_v57 }
 0x681   : >> { %v2300_v60 = vpop.permute.xlu1 %2299 }
 0x682   : >> { %v2319_v22 = vadd.f32 %v2300_v60, %v2254_v41  ;;  %v2320_v30 = vadd.f32 %v2300_v60, %v2255_v8 }
 0x684   : >> { %2365 = vrot.lane.b32.xlu0 %v2320_v30, %s2667_s8  ;;  %2363 = vrot.lane.b32.xlu1 %v2319_v22, %s2667_s8 }
 0x688   : >> { %2369 = vrot.lane.b32.xlu0 %v2322_v15, %s2667_s8  ;;  %2367 = vrot.lane.b32.xlu1 %v2321_v26, %s2667_s8 }
 0x6d8   : >> { %v2342_v53 = vpop.permute.xlu0 %2341  ;;  %v2340_v13 = vpop.permute.xlu1 %2339 }
 0x6d9   : >> { %2398 = vst.msk [vmem:[%s4366_s20 + $0x8] sm:$0xff] %vm1984_vm2, %v2342_v53  ;;  %v2371_v43 = vsel %vm784_vm10, %v2340_v13, %v2342_v53 }
 0x6da   : >> { %2397 = vst [vmem:[%s4366_s20] sm:$0xff] %v2371_v43 }
 0x6dc   : >> { %v2346_v44 = vpop.permute.xlu0 %2345  ;;  %v2344_v27 = vpop.permute.xlu1 %2343 }
 0x6dd   : >> { %2400 = vst.msk [vmem:[%s4366_s20 + $0x18] sm:$0xff] %vm1984_vm2, %v2346_v44  ;;  %v2372_v17 = vsel %vm784_vm10, %v2344_v27, %v2346_v44 }
 0x6de   : >> { %2399 = vst [vmem:[%s4366_s20 + $0x10] sm:$0xff] %v2372_v17 }
 0x6e0   : >> { %v2350_v7 = vpop.permute.xlu0 %2349  ;;  %v2348_v3 = vpop.permute.xlu1 %2347 }
 0x6e1   : >> { %2402 = vst.msk [vmem:[%s4366_s20 + $0x28] sm:$0xff] %vm1984_vm2, %v2350_v7  ;;  %v2373_v24 = vsel %vm784_vm10, %v2348_v3, %v2350_v7 }
 0x6e2   : >> { %2401 = vst [vmem:[%s4366_s20 + $0x20] sm:$0xff] %v2373_v24 }
 0x6e4   : >> { %v2354_v4 = vpop.permute.xlu0 %2353  ;;  %v2352_v46 = vpop.permute.xlu1 %2351 }
 0x6e5   : >> { %2404 = vst.msk [vmem:[%s4366_s20 + $0x38] sm:$0xff] %vm1984_vm2, %v2354_v4  ;;  %v2374_v31 = vsel %vm784_vm10, %v2352_v46, %v2354_v4 }
 0x6e6   : >> { %2403 = vst [vmem:[%s4366_s20 + $0x30] sm:$0xff] %v2374_v31 }
 0x6e8   : >> { %v2358_v52 = vpop.permute.xlu0 %2357  ;;  %v2356_v6 = vpop.permute.xlu1 %2355 }
 0x6e9   : >> { %2406 = vst.msk [vmem:[%s4366_s20 + $0x48] sm:$0xff] %vm1984_vm2, %v2358_v52  ;;  %v2375_v47 = vsel %vm784_vm10, %v2356_v6, %v2358_v52 }
 0x6ea   : >> { %2405 = vst [vmem:[%s4366_s20 + $0x40] sm:$0xff] %v2375_v47 }
 0x6ec   : >> { %v2362_v45 = vpop.permute.xlu0 %2361  ;;  %v2360_v38 = vpop.permute.xlu1 %2359 }
 0x6ed   : >> { %2408 = vst.msk [vmem:[%s4366_s20 + $0x58] sm:$0xff] %vm1984_vm2, %v2362_v45  ;;  %v2376_v36 = vsel %vm784_vm10, %v2360_v38, %v2362_v45 }
 0x6ee   : >> { %2407 = vst [vmem:[%s4366_s20 + $0x50] sm:$0xff] %v2376_v36 }
 0x6f6   : >> { %v2366_v48 = vpop.permute.xlu0 %2365  ;;  %v2364_v11 = vpop.permute.xlu1 %2363  ;;  %550 = sbr.rel (!%p548_p4) target bundleno = 194 (0xc2), region = 92 }
 0x6f7   : >> { %2410 = vst.msk [vmem:[%s4366_s20 + $0x68] sm:$0xff] %vm1984_vm2, %v2366_v48  ;;  %v2377_v19 = vsel %vm784_vm10, %v2364_v11, %v2366_v48 }
 0x6f8   : >> { %2409 = vst [vmem:[%s4366_s20 + $0x60] sm:$0xff] %v2377_v19 }
 0x6fa   : >> { %v2370_v59 = vpop.permute.xlu0 %2369  ;;  %v2368_v50 = vpop.permute.xlu1 %2367 }
 0x6fb   : >> { %2412 = vst.msk [vmem:[%s4366_s20 + $0x78] sm:$0xff] %vm1984_vm2, %v2370_v59  ;;  %v2378_v16 = vsel %vm784_vm10, %v2368_v50, %v2370_v59 }
 0x6fc   : >> { %2411 = vst [vmem:[%s4366_s20 + $0x70] sm:$0xff] %v2378_v16 }
 0x6fd PF: > { %s15_s18 = sadd.s32 1, %s2652_s18  }
 0x6fe   : > { %p12_p5 = scmp.ge.s32.totalorder %s15_s18, 7  }
 0x700   :  { %14 = sbr.rel (!%p12_p5) target bundleno = 1 (0x1), region = 103 }

</bundles_post_ra>
